<compile_context>
chip_gen: v5e
topology: v5e:2x2
jax: 0.10.0
libtpu: 0.0.40
codegen_flags: <defaults>
</compile_context>

<pallas_src>
import functools

import jax
import jax.numpy as jnp
from jax import lax
from jax.experimental import pallas as pl
from jax.experimental.pallas import tpu as pltpu

EPS = 1e-5
NEG_SLOPE = 0.2
LANE = 128


# ---------------------------------------------------------------------------
# small helpers
# ---------------------------------------------------------------------------
def _round_up(x, m):
    return (x + m - 1) // m * m


def _pad_row(v, n):
    return jnp.pad(v, (0, n - v.shape[0]))[None, :].astype(jnp.float32)


def _bytes(*arrs):
    return int(sum(int(a.size) * a.dtype.itemsize for a in arrs))


def _vmem_budget_bytes():
    """~75% of per-core VMEM: ~96 MiB on v5e/v6e (128 MiB), ~48 MiB on v7x (64 MiB)."""
    try:
        cap = int(pltpu.get_tpu_info().vmem_capacity_bytes)
    except Exception:
        cap = 64 * 1024 * 1024          # conservative fallback (v7x per-core VMEM)
    return (cap * 3) // 4


def _pick_tile_rows(total, max_rows):
    """Largest row tile <= max_rows that is a multiple of 8 and divides `total`
    (so no HBM padding copy is needed).  Falls back to a padded layout only if
    no such divisor exists."""
    if total <= 8:
        return total, 1, total
    cap = max(8, min(max_rows, total))
    for t in range(cap - cap % 8, 7, -8):
        if total % t == 0:
            return t, total // t, total
    tile = cap - cap % 8
    n_tiles = -(-total // tile)
    return tile, n_tiles, n_tiles * tile


def _split_shards(n_tiles):
    """2-way split of the leading ("parallel") grid axis so both v7x
    TensorCores get half the tiles; per-shard BN stat rows avoid races."""
    return (2, n_tiles // 2) if (n_tiles % 2 == 0 and n_tiles >= 2) else (1, n_tiles)


# ---------------------------------------------------------------------------
# Pallas kernels
# ---------------------------------------------------------------------------
def _conv1_stats_kernel(p_ref, w_ref, y_ref, s_ref, q_ref):
    """One M-tile of conv1-as-matmul (bf16 MXU, f32 acc), bf16 writeback,
    plus per-shard BN partial stats (f32 sum / sum-of-squares)."""
    @pl.when(pl.program_id(1) == 0)
    def _init():
        s_ref[...] = jnp.zeros_like(s_ref)
        q_ref[...] = jnp.zeros_like(q_ref)

    y = jnp.dot(p_ref[...], w_ref[...], preferred_element_type=jnp.float32)
    y_ref[...] = y.astype(y_ref.dtype)
    s_ref[0] = s_ref[0] + jnp.sum(y, axis=0, keepdims=True)
    q_ref[0] = q_ref[0] + jnp.sum(y * y, axis=0, keepdims=True)


def _conv2_dual_kernel(y1_ref, s1_ref, t1_ref, w2_ref, pd_ref, w3_ref,
                       ym_ref, yd_ref, sm_ref, qm_ref, sd_ref, qd_ref,
                       pad_ref, acc_ref, *, Ho, Wo):
    """Fused second stage, one image per grid step:
       * BN1 (precomputed scale/shift) + LeakyReLU applied in-kernel to the
         raw conv1 output (no separate HBM apply pass),
       * 3x3 conv done as 9 shifted MXU matmuls over a zero-padded VMEM image
         (no HBM im2col materialization),
       * tiny 1x1 direct-path conv fused in,
       * per-shard BN partial stats accumulated for both branches."""
    Cp = acc_ref.shape[-1]

    @pl.when(pl.program_id(1) == 0)
    def _init():
        sm_ref[...] = jnp.zeros_like(sm_ref)
        qm_ref[...] = jnp.zeros_like(qm_ref)
        sd_ref[...] = jnp.zeros_like(sd_ref)
        qd_ref[...] = jnp.zeros_like(qd_ref)

    # BN1 + LeakyReLU(0.2) on the raw conv1 output (f32 math).
    a = y1_ref[0].astype(jnp.float32) * s1_ref[...] + t1_ref[...]      # (Ho,Wo,Cp)
    a = jnp.where(a >= 0.0, a, NEG_SLOPE * a)

    # Zero-padded activation image held in VMEM (conv padding = exact zeros).
    pad_ref[...] = jnp.zeros_like(pad_ref)
    pad_ref[1:Ho + 1, 1:Wo + 1, :] = a

    # 3x3 conv = 9 shifted matmuls accumulated into an f32 VMEM scratch.
    acc_ref[...] = jnp.zeros_like(acc_ref)
    for tap in range(9):
        dh, dw = divmod(tap, 3)
        patch = pad_ref[dh:dh + Ho, dw:dw + Wo, :]
        patch = patch.reshape(Ho * Wo, Cp).astype(jnp.bfloat16)
        acc_ref[...] += jnp.dot(patch, w2_ref[tap],
                                preferred_element_type=jnp.float32)
    ym = acc_ref[...]
    ym_ref[0] = ym.astype(ym_ref.dtype)
    sm_ref[0] = sm_ref[0] + jnp.sum(ym, axis=0, keepdims=True)
    qm_ref[0] = qm_ref[0] + jnp.sum(ym * ym, axis=0, keepdims=True)

    # Direct path: 1x1 conv on the 2x2-average-pooled input (tiny K).
    yd = jnp.dot(pd_ref[0], w3_ref[...], preferred_element_type=jnp.float32)
    yd_ref[0] = yd.astype(yd_ref.dtype)
    sd_ref[0] = sd_ref[0] + jnp.sum(yd, axis=0, keepdims=True)
    qd_ref[0] = qd_ref[0] + jnp.sum(yd * yd, axis=0, keepdims=True)


def _bn_act_merge_kernel(ym_ref, yd_ref, sm_ref, tm_ref, sd_ref, td_ref, o_ref):
    """Normalize main + direct branches (precomputed scale/shift), LeakyReLU
    each, fused residual merge (main + direct)/2; Cout slice folded in."""
    a = ym_ref[...].astype(jnp.float32) * sm_ref[...] + tm_ref[...]
    a = jnp.where(a >= 0.0, a, NEG_SLOPE * a)
    b = yd_ref[...].astype(jnp.float32) * sd_ref[...] + td_ref[...]
    b = jnp.where(b >= 0.0, b, NEG_SLOPE * b)
    out = (a + b) * 0.5
    o_ref[...] = out[:, :o_ref.shape[-1]].astype(o_ref.dtype)


# ---------------------------------------------------------------------------
# pallas_call wrappers
# ---------------------------------------------------------------------------
def _conv1_pass(p, w, tile_m, shards, tiles_per_shard, vmem_limit):
    Mp, K = p.shape
    Cp = w.shape[1]
    T = tiles_per_shard
    stat = jax.ShapeDtypeStruct((shards, 1, Cp), jnp.float32)
    stat_spec = pl.BlockSpec((1, 1, Cp), lambda s, t: (s, 0, 0))
    cost = pl.CostEstimate(
        flops=2 * Mp * K * Cp, transcendentals=0,
        bytes_accessed=_bytes(p, w) + Mp * Cp * 2 + 2 * shards * Cp * 4)
    return pl.pallas_call(
        _conv1_stats_kernel,
        out_shape=(jax.ShapeDtypeStruct((Mp, Cp), jnp.bfloat16), stat, stat),
        grid=(shards, T),
        in_specs=[pl.BlockSpec((tile_m, K), lambda s, t: (s * T + t, 0)),
                  # TODO(synk): pipeline_mode=pl.Buffered(1) on the loop-invariant
                  # weight once single-buffering is supported, to free VMEM.
                  pl.BlockSpec((K, Cp), lambda s, t: (0, 0))],
        out_specs=(pl.BlockSpec((tile_m, Cp), lambda s, t: (s * T + t, 0)),
                   stat_spec, stat_spec),
        compiler_params=pltpu.CompilerParams(
            dimension_semantics=("parallel", "arbitrary"),
            vmem_limit_bytes=vmem_limit),
        cost_estimate=cost,
    )(p, w)


def _conv2_pass(y1_img, scale1, shift1, w2m, pd, w3m, shards, imgs_per_shard,
                vmem_limit):
    N, Ho, Wo, Cp = y1_img.shape
    HWo = Ho * Wo
    K3 = pd.shape[-1]
    Hp, Wp = Ho + 2, Wo + 2
    T = imgs_per_shard
    stat = jax.ShapeDtypeStruct((shards, 1, Cp), jnp.float32)
    stat_spec = pl.BlockSpec((1, 1, Cp), lambda s, t: (s, 0, 0))
    out_img_spec = pl.BlockSpec((1, HWo, Cp), lambda s, t: (s * T + t, 0, 0))
    cost = pl.CostEstimate(
        flops=2 * N * HWo * Cp * (9 * Cp + K3), transcendentals=0,
        bytes_accessed=_bytes(y1_img, pd, w2m, w3m)
        + 2 * N * HWo * Cp * 2 + 4 * shards * Cp * 4)
    kern = functools.partial(_conv2_dual_kernel, Ho=Ho, Wo=Wo)
    return pl.pallas_call(
        kern,
        out_shape=(jax.ShapeDtypeStruct((N, HWo, Cp), jnp.bfloat16),
                   jax.ShapeDtypeStruct((N, HWo, Cp), jnp.bfloat16),
                   stat, stat, stat, stat),
        grid=(shards, T),
        in_specs=[pl.BlockSpec((1, Ho, Wo, Cp), lambda s, t: (s * T + t, 0, 0, 0)),
                  pl.BlockSpec((1, Cp), lambda s, t: (0, 0)),
                  pl.BlockSpec((1, Cp), lambda s, t: (0, 0)),
                  pl.BlockSpec((9, Cp, Cp), lambda s, t: (0, 0, 0)),
                  pl.BlockSpec((1, HWo, K3), lambda s, t: (s * T + t, 0, 0)),
                  pl.BlockSpec((K3, Cp), lambda s, t: (0, 0))],
        out_specs=(out_img_spec, out_img_spec,
                   stat_spec, stat_spec, stat_spec, stat_spec),
        scratch_shapes=[pltpu.VMEM((Hp, Wp, Cp), jnp.float32),   # padded image
                        pltpu.VMEM((HWo, Cp), jnp.float32)],     # f32 accumulator
        compiler_params=pltpu.CompilerParams(
            dimension_semantics=("parallel", "arbitrary"),
            vmem_limit_bytes=vmem_limit),
        cost_estimate=cost,
    )(y1_img, scale1, shift1, w2m, pd, w3m)


def _bn_act_merge_pass(ym, yd, sm, tm, sd, td, tile_m, cout, vmem_limit):
    Mtot, Cp = ym.shape
    n_tiles = Mtot // tile_m
    row = lambda: pl.BlockSpec((1, Cp), lambda i: (0, 0))
    return pl.pallas_call(
        _bn_act_merge_kernel,
        out_shape=jax.ShapeDtypeStruct((Mtot, cout), jnp.float32),
        grid=(n_tiles,),
        in_specs=[pl.BlockSpec((tile_m, Cp), lambda i: (i, 0)),
                  pl.BlockSpec((tile_m, Cp), lambda i: (i, 0)),
                  row(), row(), row(), row()],
        out_specs=pl.BlockSpec((tile_m, cout), lambda i: (i, 0)),
        compiler_params=pltpu.CompilerParams(
            dimension_semantics=("parallel",),
            vmem_limit_bytes=vmem_limit),
    )(ym, yd, sm, tm, sd, td)


# ---------------------------------------------------------------------------
# Plain-JAX glue: im2col, weight layout, BN finalize, spectral norm, params
# ---------------------------------------------------------------------------
def im2col(x_nhwc, k, s, p):
    """x: (N,H,W,C) -> (N*Ho*Wo, k*k*C) patches, column order (kh, kw, c)."""
    N, H, W, C = x_nhwc.shape
    xp = jnp.pad(x_nhwc, ((0, 0), (p, p), (p, p), (0, 0)))
    Ho = (H + 2 * p - k) // s + 1
    Wo = (W + 2 * p - k) // s + 1
    cols = [xp[:, kh:kh + s * Ho:s, kw:kw + s * Wo:s, :]
            for kh in range(k) for kw in range(k)]
    pat = jnp.concatenate(cols, axis=-1)
    return pat.reshape(N * Ho * Wo, k * k * C), Ho, Wo


def _conv_weight_mat(w_oihw, cout_pad, k_rows=None, dtype=jnp.bfloat16):
    """(Cout,Cin,kh,kw) -> (kh*kw*Cin, Cout_pad) bf16, rows ordered (kh,kw,cin)
    to match the im2col column order; optional zero rows appended to k_rows."""
    cout, cin, kh, kw = w_oihw.shape
    m = jnp.transpose(w_oihw, (2, 3, 1, 0)).reshape(kh * kw * cin, cout)
    m = jnp.pad(m, ((0, 0), (0, cout_pad - cout)))
    if k_rows is not None and k_rows > m.shape[0]:
        m = jnp.pad(m, ((0, k_rows - m.shape[0]), (0, 0)))
    return m.astype(dtype)


def _conv2_weight_taps(w_oihw, cpad, dtype=jnp.bfloat16):
    """(Cout,Cin,3,3) -> (9, Cpad, Cpad): tap t = dh*3+dw, rows cin, cols cout."""
    cout, cin, kh, kw = w_oihw.shape
    m = jnp.transpose(w_oihw, (2, 3, 1, 0))                     # (3,3,cin,cout)
    m = jnp.pad(m, ((0, 0), (0, 0), (0, cpad - cin), (0, cpad - cout)))
    return m.reshape(kh * kw, cpad, cpad).astype(dtype)


def _bn_scale_shift(s, q, count, gamma, beta, cpad):
    """Finalize per-channel BN stats (sum per-shard partials) -> scale/shift."""
    s = jnp.sum(s, axis=0)                  # (1, Cp)
    q = jnp.sum(q, axis=0)
    mean = s / count
    # E[x^2]-E[x]^2 in f32; clamped at 0 (see review note on cancellation).
    var = jnp.maximum(q / count - mean * mean, 0.0)
    g = _pad_row(gamma, cpad)
    b = _pad_row(beta, cpad)
    scale = g * lax.rsqrt(var + EPS)
    shift = b - mean * scale
    return scale, shift


def spectral_normalize(w_oihw, key, n_iter=5):
    """torch spectral_norm semantics: divide by sigma of w.reshape(out,-1).
    (Applied once at parameter setup instead of per-forward with persistent u.)"""
    cout = w_oihw.shape[0]
    w_mat = w_oihw.reshape(cout, -1)
    u = jax.random.normal(key, (cout,), dtype=jnp.float32)
    u = u / (jnp.linalg.norm(u) + 1e-12)
    v = None
    for _ in range(n_iter):
        v = w_mat.T @ u
        v = v / (jnp.linalg.norm(v) + 1e-12)
        u = w_mat @ v
        u = u / (jnp.linalg.norm(u) + 1e-12)
    sigma = u @ (w_mat @ v)
    return w_oihw / sigma


def init_params(key, in_planes, out_planes):
    ks = jax.random.split(key, 9)
    w1 = 0.1 * jax.random.normal(ks[0], (out_planes, in_planes, 4, 4), jnp.float32)
    w2 = 0.1 * jax.random.normal(ks[1], (out_planes, out_planes, 3, 3), jnp.float32)
    w3 = 0.1 * jax.random.normal(ks[2], (out_planes, in_planes, 1, 1), jnp.float32)
    w1 = spectral_normalize(w1, ks[3])
    w2 = spectral_normalize(w2, ks[4])
    w3 = spectral_normalize(w3, ks[5])
    g1 = 1.0 + 0.1 * jax.random.normal(ks[6], (out_planes,), jnp.float32)
    g2 = 1.0 + 0.1 * jax.random.normal(ks[7], (out_planes,), jnp.float32)
    g3 = 1.0 + 0.1 * jax.random.normal(ks[8], (out_planes,), jnp.float32)
    b1 = 0.1 * jnp.arange(out_planes, dtype=jnp.float32) / out_planes
    b2 = -0.1 * jnp.arange(out_planes, dtype=jnp.float32) / out_planes
    b3 = 0.05 * jnp.ones((out_planes,), jnp.float32)
    return dict(w1=w1, w2=w2, w3=w3, g1=g1, b1=b1, g2=g2, b2=b2, g3=g3, b3=b3)


# ---------------------------------------------------------------------------
# Forward pass (DownBlockComp)
# ---------------------------------------------------------------------------
@functools.partial(jax.jit, static_argnames=("max_tile_rows",))
def down_block_comp(x_nchw, params, max_tile_rows=2048):
    N, Cin, H, W = x_nchw.shape
    assert H % 2 == 0 and W % 2 == 0, "DownBlockComp expects even spatial dims"
    Cout = params["w1"].shape[0]
    Ho, Wo = H // 2, W // 2
    HWo = Ho * Wo
    M = N * HWo
    Cp = _round_up(Cout, LANE)
    vmem_limit = _vmem_budget_bytes()

    x = jnp.transpose(x_nchw, (0, 2, 3, 1)).astype(jnp.float32)        # NHWC
    x_bf = x.astype(jnp.bfloat16)

    # ---- conv1: 4x4 / stride 2 / pad 1 as an im2col matmul + BN1 stats ----
    # TODO(synk): stream the 4x4/s2 patch construction inside the kernel (like
    # conv2 below) to avoid the ~4x im2col duplication through HBM.
    p1, _, _ = im2col(x_bf, 4, 2, 1)                 # (M, 16*Cin) - no K padding
    K1 = p1.shape[1]
    w1m = _conv_weight_mat(params["w1"], Cp)         # (16*Cin, Cp) bf16

    bytes_per_row = 4 * (K1 + Cp)                    # bf16 in+out, double buffered
    max_rows1 = max(8, min(max_tile_rows,
                           (vmem_limit // 2 - 4 * K1 * Cp) // bytes_per_row))
    tile1, n1, Mp1 = _pick_tile_rows(M, max_rows1)
    if Mp1 != M:
        p1 = jnp.pad(p1, ((0, Mp1 - M), (0, 0)))     # rare (no multiple-of-8 divisor)
    s1h, t1h = _split_shards(n1)
    y1_raw, s1, q1 = _conv1_pass(p1, w1m, tile1, s1h, t1h, vmem_limit)
    scale1, shift1 = _bn_scale_shift(s1, q1, M, params["g1"], params["b1"], Cp)

    y1_img = y1_raw[:M].reshape(N, Ho, Wo, Cp)       # free when Mp1 == M

    # ---- direct path input: AvgPool(2,2) in f32 -> (N, HWo, K3) bf16 ------
    pooled = x.reshape(N, Ho, 2, Wo, 2, Cin).mean(axis=(2, 4))
    K3 = _round_up(Cin, 16)                          # sublane pad only, no 128 round-up
    pd = pooled.reshape(N, HWo, Cin).astype(jnp.bfloat16)
    if K3 != Cin:
        pd = jnp.pad(pd, ((0, 0), (0, 0), (0, K3 - Cin)))
    w3m = _conv_weight_mat(params["w3"], Cp, k_rows=K3)          # (K3, Cp)

    # ---- conv2 (3x3) + direct 1x1, fully in-kernel (fused BN1 apply) ------
    w2m = _conv2_weight_taps(params["w2"], Cp)                   # (9, Cp, Cp)
    s2h, t2h = _split_shards(N)
    ym, yd, sm, qm, sd, qd = _conv2_pass(y1_img, scale1, shift1, w2m, pd, w3m,
                                         s2h, t2h, vmem_limit)
    scale2, shift2 = _bn_scale_shift(sm, qm, M, params["g2"], params["b2"], Cp)
    scale3, shift3 = _bn_scale_shift(sd, qd, M, params["g3"], params["b3"], Cp)

    # ---- BN + LeakyReLU on both branches + (main + direct)/2, fused -------
    ym2 = ym.reshape(M, Cp)
    yd2 = yd.reshape(M, Cp)
    max_rows3 = max(8, min(max_tile_rows, vmem_limit // (12 * Cp)))
    tile3, n3, Mp3 = _pick_tile_rows(M, max_rows3)
    if Mp3 != M:
        ym2 = jnp.pad(ym2, ((0, Mp3 - M), (0, 0)))
        yd2 = jnp.pad(yd2, ((0, Mp3 - M), (0, 0)))
    out = _bn_act_merge_pass(ym2, yd2, scale2, shift2, scale3, shift3,
                             tile3, Cout, vmem_limit)
    out = out[:M].reshape(N, Ho, Wo, Cout)
    # NHWC is the natural layout for a following block's im2col; transpose back
    # to NCHW only to match the PyTorch module's output convention.
    return jnp.transpose(out, (0, 3, 1, 2))


# ---------------------------------------------------------------------------
# Pure-JAX reference (lax convs, bf16 operands / f32 accumulation, f32 BN)
# ---------------------------------------------------------------------------
def _bn_lrelu_ref(y_nchw, gamma, beta):
    mean = jnp.mean(y_nchw, axis=(0, 2, 3), keepdims=True)
    var = jnp.mean((y_nchw - mean) ** 2, axis=(0, 2, 3), keepdims=True)
    z = (y_nchw - mean) * lax.rsqrt(var + EPS) * gamma[None, :, None, None] \
        + beta[None, :, None, None]
    return jnp.where(z >= 0, z, NEG_SLOPE * z)


def reference(x_nchw, p):
    dn = ("NCHW", "OIHW", "NCHW")
    bf = jnp.bfloat16
    y = lax.conv_general_dilated(x_nchw.astype(bf), p["w1"].astype(bf), (2, 2),
                                 [(1, 1), (1, 1)], dimension_numbers=dn,
                                 preferred_element_type=jnp.float32)
    y = _bn_lrelu_ref(y, p["g1"], p["b1"])
    y = lax.conv_general_dilated(y.astype(bf), p["w2"].astype(bf), (1, 1),
                                 [(1, 1), (1, 1)], dimension_numbers=dn,
                                 preferred_element_type=jnp.float32)
    main = _bn_lrelu_ref(y, p["g2"], p["b2"])

    N, C, H, W = x_nchw.shape
    pooled = x_nchw.reshape(N, C, H // 2, 2, W // 2, 2).mean(axis=(3, 5))
    d = lax.conv_general_dilated(pooled.astype(bf), p["w3"].astype(bf), (1, 1),
                                 [(0, 0), (0, 0)], dimension_numbers=dn,
                                 preferred_element_type=jnp.float32)
    direct = _bn_lrelu_ref(d, p["g3"], p["b3"])
    return (main + direct) / 2.0


# ---------------------------------------------------------------------------
if __name__ == "__main__":
    key = jax.random.PRNGKey(0)
    k_x, k_p = jax.random.split(key)

    N, Cin, Cout, H, W = 2, 4, 8, 16, 16
    x = jax.random.normal(k_x, (N, Cin, H, W), jnp.float32)
    params = init_params(k_p, Cin, Cout)

    # max_tile_rows=32 -> 4 conv1 M-tiles (2 shards x 2 tiles) and 2 conv2
    # image shards, exercising cross-tile / cross-shard BN stat accumulation.
    out = jax.block_until_ready(down_block_comp(x, params, max_tile_rows=32))
    ref = jax.block_until_ready(reference(x, params))

    assert out.shape == (N, Cout, H // 2, W // 2), out.shape
    err = float(jnp.max(jnp.abs(out - ref)))
    # bf16 storage of conv1/conv2/direct raw outputs (review item) -> a bit
    # looser tolerance than the all-f32-intermediate version.
    assert jnp.allclose(out, ref, rtol=2e-2, atol=2e-2), err

    print("KERNEL_OK")
</pallas_src>

<mosaic_0001>
module attributes {stable_mosaic.version = 11 : i64} {
  func.func @_conv1_stats_kernel(%arg0: i32, %arg1: i32, %arg2: memref<32x64xbf16, #tpu.memory_space<vmem>>, %arg3: memref<64x128xbf16, #tpu.memory_space<vmem>>, %arg4: memref<32x128xbf16, #tpu.memory_space<vmem>>, %arg5: memref<1x1x128xf32, #tpu.memory_space<vmem>>, %arg6: memref<1x1x128xf32, #tpu.memory_space<vmem>>) attributes {dimension_semantics = [#tpu.dimension_semantics<parallel>, #tpu.dimension_semantics<arbitrary>], iteration_bounds = array<i64: 2, 2>, scalar_prefetch = 0 : i64, scratch_operands = 0 : i64, tpu.core_type = #tpu.core_type<tc>, window_params = [{transform_indices = @transform_0, window_bounds = array<i64: 32, 64>}, {pipeline_mode = #tpu.pipeline_mode<synchronous>, transform_indices = @transform_1, window_bounds = array<i64: 64, 128>}, {transform_indices = @transform_2, window_bounds = array<i64: 32, 128>}, {transform_indices = @transform_3, window_bounds = array<i64: 1, 1, 128>}, {transform_indices = @transform_4, window_bounds = array<i64: 1, 1, 128>}]} {
    %c0_i32 = arith.constant 0 : i32
    %0 = arith.cmpi eq, %arg1, %c0_i32 : i32
    %1 = arith.extui %0 : i1 to i32
    %c0_i32_0 = arith.constant 0 : i32
    %2 = arith.cmpi ne, %1, %c0_i32_0 : i32
    scf.if %2 {
      %cst_20 = arith.constant 0.000000e+00 : f32
      %25 = vector.broadcast %cst_20 : f32 to vector<1x1x128xf32>
      %c0_21 = arith.constant 0 : index
      %c0_22 = arith.constant 0 : index
      %c0_23 = arith.constant 0 : index
      %26 = vector.load %arg5[%c0_21, %c0_22, %c0_23] : memref<1x1x128xf32, #tpu.memory_space<vmem>>, vector<1x1x128xf32>
      tpu.vector_store %arg5[%c0_21, %c0_22, %c0_23], %25 {strides = array<i32>} : memref<1x1x128xf32, #tpu.memory_space<vmem>>, vector<1x1x128xf32>,
      %cst_24 = arith.constant 0.000000e+00 : f32
      %27 = vector.broadcast %cst_24 : f32 to vector<1x1x128xf32>
      %c0_25 = arith.constant 0 : index
      %c0_26 = arith.constant 0 : index
      %c0_27 = arith.constant 0 : index
      %28 = vector.load %arg6[%c0_25, %c0_26, %c0_27] : memref<1x1x128xf32, #tpu.memory_space<vmem>>, vector<1x1x128xf32>
      tpu.vector_store %arg6[%c0_25, %c0_26, %c0_27], %27 {strides = array<i32>} : memref<1x1x128xf32, #tpu.memory_space<vmem>>, vector<1x1x128xf32>,
    } else {
    }
    %c0 = arith.constant 0 : index
    %c0_1 = arith.constant 0 : index
    %3 = vector.load %arg2[%c0, %c0_1] : memref<32x64xbf16, #tpu.memory_space<vmem>>, vector<32x64xbf16>
    %c0_2 = arith.constant 0 : index
    %c0_3 = arith.constant 0 : index
    %4 = vector.load %arg3[%c0_2, %c0_3] : memref<64x128xbf16, #tpu.memory_space<vmem>>, vector<64x128xbf16>
    %cst = arith.constant dense<0.000000e+00> : vector<32x128xf32>
    %5 = tpu.matmul %3, %4, %cst {dimension_numbers = #tpu.dot_dimension_numbers<[1], [0], [0], [1], [0, 0, 1, 1], [], []>} : vector<32x64xbf16>, vector<64x128xbf16>, vector<32x128xf32> -> vector<32x128xf32>
    %6 = arith.truncf %5 : vector<32x128xf32> to vector<32x128xbf16>
    %c0_4 = arith.constant 0 : index
    %c0_5 = arith.constant 0 : index
    %7 = vector.load %arg4[%c0_4, %c0_5] : memref<32x128xbf16, #tpu.memory_space<vmem>>, vector<32x128xbf16>
    tpu.vector_store %arg4[%c0_4, %c0_5], %6 {strides = array<i32>} : memref<32x128xbf16, #tpu.memory_space<vmem>>, vector<32x128xbf16>,
    %c0_6 = arith.constant 0 : index
    %c0_7 = arith.constant 0 : index
    %c0_8 = arith.constant 0 : index
    %8 = vector.load %arg5[%c0_6, %c0_7, %c0_8] : memref<1x1x128xf32, #tpu.memory_space<vmem>>, vector<1x1x128xf32>
    %9 = vector.shape_cast %8 : vector<1x1x128xf32> to vector<1x128xf32>
    %cst_9 = arith.constant dense<0.000000e+00> : vector<128xf32>
    %10 = vector.multi_reduction <add>, %5, %cst_9 [0] : vector<32x128xf32> to vector<128xf32>
    %11 = vector.shape_cast %10 : vector<128xf32> to vector<1x128xf32>
    %12 = arith.addf %9, %11 : vector<1x128xf32>
    %c0_10 = arith.constant 0 : index
    %c0_11 = arith.constant 0 : index
    %c0_12 = arith.constant 0 : index
    %13 = vector.load %arg5[%c0_10, %c0_11, %c0_12] : memref<1x1x128xf32, #tpu.memory_space<vmem>>, vector<1x1x128xf32>
    %14 = vector.shape_cast %13 : vector<1x1x128xf32> to vector<1x128xf32>
    %15 = vector.shape_cast %12 : vector<1x128xf32> to vector<1x1x128xf32>
    tpu.vector_store %arg5[%c0_10, %c0_11, %c0_12], %15 {strides = array<i32>} : memref<1x1x128xf32, #tpu.memory_space<vmem>>, vector<1x1x128xf32>,
    %c0_13 = arith.constant 0 : index
    %c0_14 = arith.constant 0 : index
    %c0_15 = arith.constant 0 : index
    %16 = vector.load %arg6[%c0_13, %c0_14, %c0_15] : memref<1x1x128xf32, #tpu.memory_space<vmem>>, vector<1x1x128xf32>
    %17 = vector.shape_cast %16 : vector<1x1x128xf32> to vector<1x128xf32>
    %18 = arith.mulf %5, %5 : vector<32x128xf32>
    %cst_16 = arith.constant dense<0.000000e+00> : vector<128xf32>
    %19 = vector.multi_reduction <add>, %18, %cst_16 [0] : vector<32x128xf32> to vector<128xf32>
    %20 = vector.shape_cast %19 : vector<128xf32> to vector<1x128xf32>
    %21 = arith.addf %17, %20 : vector<1x128xf32>
    %c0_17 = arith.constant 0 : index
    %c0_18 = arith.constant 0 : index
    %c0_19 = arith.constant 0 : index
    %22 = vector.load %arg6[%c0_17, %c0_18, %c0_19] : memref<1x1x128xf32, #tpu.memory_space<vmem>>, vector<1x1x128xf32>
    %23 = vector.shape_cast %22 : vector<1x1x128xf32> to vector<1x128xf32>
    %24 = vector.shape_cast %21 : vector<1x128xf32> to vector<1x1x128xf32>
    tpu.vector_store %arg6[%c0_17, %c0_18, %c0_19], %24 {strides = array<i32>} : memref<1x1x128xf32, #tpu.memory_space<vmem>>, vector<1x1x128xf32>,
    return
  }
  func.func @transform_0(%arg0: i32, %arg1: i32) -> (i32, i32) {
    %c2_i32 = arith.constant 2 : i32
    %0 = arith.muli %arg0, %c2_i32 : i32
    %1 = arith.addi %0, %arg1 : i32
    %c0_i32 = arith.constant 0 : i32
    %c0_i32_0 = arith.constant 0 : i32
    return %1, %c0_i32 : i32, i32
  }
  func.func @transform_1(%arg0: i32, %arg1: i32) -> (i32, i32) {
    %c0_i32 = arith.constant 0 : i32
    %c0_i32_0 = arith.constant 0 : i32
    %c0_i32_1 = arith.constant 0 : i32
    return %c0_i32, %c0_i32_0 : i32, i32
  }
  func.func @transform_2(%arg0: i32, %arg1: i32) -> (i32, i32) {
    %c2_i32 = arith.constant 2 : i32
    %0 = arith.muli %arg0, %c2_i32 : i32
    %1 = arith.addi %0, %arg1 : i32
    %c0_i32 = arith.constant 0 : i32
    %c0_i32_0 = arith.constant 0 : i32
    return %1, %c0_i32 : i32, i32
  }
  func.func @transform_3(%arg0: i32, %arg1: i32) -> (i32, i32, i32) {
    %c0_i32 = arith.constant 0 : i32
    %c0_i32_0 = arith.constant 0 : i32
    %c0_i32_1 = arith.constant 0 : i32
    return %arg0, %c0_i32, %c0_i32_0 : i32, i32, i32
  }
  func.func @transform_4(%arg0: i32, %arg1: i32) -> (i32, i32, i32) {
    %c0_i32 = arith.constant 0 : i32
    %c0_i32_0 = arith.constant 0 : i32
    %c0_i32_1 = arith.constant 0 : i32
    return %arg0, %c0_i32, %c0_i32_0 : i32, i32, i32
  }
}

module attributes {stable_mosaic.version = 11 : i64} {
  func.func @_conv2_dual_kernel(%arg0: i32, %arg1: i32, %arg2: memref<1x8x8x128xbf16, #tpu.memory_space<vmem>>, %arg3: memref<1x128xf32, #tpu.memory_space<vmem>>, %arg4: memref<1x128xf32, #tpu.memory_space<vmem>>, %arg5: memref<9x128x128xbf16, #tpu.memory_space<vmem>>, %arg6: memref<1x64x16xbf16, #tpu.memory_space<vmem>>, %arg7: memref<16x128xbf16, #tpu.memory_space<vmem>>, %arg8: memref<1x64x128xbf16, #tpu.memory_space<vmem>>, %arg9: memref<1x64x128xbf16, #tpu.memory_space<vmem>>, %arg10: memref<1x1x128xf32, #tpu.memory_space<vmem>>, %arg11: memref<1x1x128xf32, #tpu.memory_space<vmem>>, %arg12: memref<1x1x128xf32, #tpu.memory_space<vmem>>, %arg13: memref<1x1x128xf32, #tpu.memory_space<vmem>>, %arg14: memref<10x10x128xf32, #tpu.memory_space<vmem>>, %arg15: memref<64x128xf32, #tpu.memory_space<vmem>>) attributes {dimension_semantics = [#tpu.dimension_semantics<parallel>, #tpu.dimension_semantics<arbitrary>], iteration_bounds = array<i64: 2, 1>, scalar_prefetch = 0 : i64, scratch_operands = 2 : i64, tpu.core_type = #tpu.core_type<tc>, window_params = [{transform_indices = @transform_0, window_bounds = array<i64: 1, 8, 8, 128>}, {pipeline_mode = #tpu.pipeline_mode<synchronous>, transform_indices = @transform_1, window_bounds = array<i64: 1, 128>}, {pipeline_mode = #tpu.pipeline_mode<synchronous>, transform_indices = @transform_2, window_bounds = array<i64: 1, 128>}, {pipeline_mode = #tpu.pipeline_mode<synchronous>, transform_indices = @transform_3, window_bounds = array<i64: 9, 128, 128>}, {transform_indices = @transform_4, window_bounds = array<i64: 1, 64, 16>}, {pipeline_mode = #tpu.pipeline_mode<synchronous>, transform_indices = @transform_5, window_bounds = array<i64: 16, 128>}, {transform_indices = @transform_6, window_bounds = array<i64: 1, 64, 128>}, {transform_indices = @transform_7, window_bounds = array<i64: 1, 64, 128>}, {transform_indices = @transform_8, window_bounds = array<i64: 1, 1, 128>}, {transform_indices = @transform_9, window_bounds = array<i64: 1, 1, 128>}, {transform_indices = @transform_10, window_bounds = array<i64: 1, 1, 128>}, {transform_indices = @transform_11, window_bounds = array<i64: 1, 1, 128>}]} {
    %c0_i32 = arith.constant 0 : i32
    %0 = arith.cmpi eq, %arg1, %c0_i32 : i32
    %1 = arith.extui %0 : i1 to i32
    %c0_i32_0 = arith.constant 0 : i32
    %2 = arith.cmpi ne, %1, %c0_i32_0 : i32
    scf.if %2 {
      %cst_152 = arith.constant 0.000000e+00 : f32
      %152 = vector.broadcast %cst_152 : f32 to vector<1x1x128xf32>
      %c0_153 = arith.constant 0 : index
      %c0_154 = arith.constant 0 : index
      %c0_155 = arith.constant 0 : index
      %153 = vector.load %arg10[%c0_153, %c0_154, %c0_155] : memref<1x1x128xf32, #tpu.memory_space<vmem>>, vector<1x1x128xf32>
      tpu.vector_store %arg10[%c0_153, %c0_154, %c0_155], %152 {strides = array<i32>} : memref<1x1x128xf32, #tpu.memory_space<vmem>>, vector<1x1x128xf32>,
      %cst_156 = arith.constant 0.000000e+00 : f32
      %154 = vector.broadcast %cst_156 : f32 to vector<1x1x128xf32>
      %c0_157 = arith.constant 0 : index
      %c0_158 = arith.constant 0 : index
      %c0_159 = arith.constant 0 : index
      %155 = vector.load %arg11[%c0_157, %c0_158, %c0_159] : memref<1x1x128xf32, #tpu.memory_space<vmem>>, vector<1x1x128xf32>
      tpu.vector_store %arg11[%c0_157, %c0_158, %c0_159], %154 {strides = array<i32>} : memref<1x1x128xf32, #tpu.memory_space<vmem>>, vector<1x1x128xf32>,
      %cst_160 = arith.constant 0.000000e+00 : f32
      %156 = vector.broadcast %cst_160 : f32 to vector<1x1x128xf32>
      %c0_161 = arith.constant 0 : index
      %c0_162 = arith.constant 0 : index
      %c0_163 = arith.constant 0 : index
      %157 = vector.load %arg12[%c0_161, %c0_162, %c0_163] : memref<1x1x128xf32, #tpu.memory_space<vmem>>, vector<1x1x128xf32>
      tpu.vector_store %arg12[%c0_161, %c0_162, %c0_163], %156 {strides = array<i32>} : memref<1x1x128xf32, #tpu.memory_space<vmem>>, vector<1x1x128xf32>,
      %cst_164 = arith.constant 0.000000e+00 : f32
      %158 = vector.broadcast %cst_164 : f32 to vector<1x1x128xf32>
      %c0_165 = arith.constant 0 : index
      %c0_166 = arith.constant 0 : index
      %c0_167 = arith.constant 0 : index
      %159 = vector.load %arg13[%c0_165, %c0_166, %c0_167] : memref<1x1x128xf32, #tpu.memory_space<vmem>>, vector<1x1x128xf32>
      tpu.vector_store %arg13[%c0_165, %c0_166, %c0_167], %158 {strides = array<i32>} : memref<1x1x128xf32, #tpu.memory_space<vmem>>, vector<1x1x128xf32>,
    } else {
    }
    %c0 = arith.constant 0 : index
    %c0_1 = arith.constant 0 : index
    %c0_2 = arith.constant 0 : index
    %c0_3 = arith.constant 0 : index
    %3 = vector.load %arg2[%c0, %c0_1, %c0_2, %c0_3] : memref<1x8x8x128xbf16, #tpu.memory_space<vmem>>, vector<1x8x8x128xbf16>
    %4 = vector.shape_cast %3 : vector<1x8x8x128xbf16> to vector<8x8x128xbf16>
    %5 = arith.extf %4 : vector<8x8x128xbf16> to vector<8x8x128xf32>
    %c0_4 = arith.constant 0 : index
    %c0_5 = arith.constant 0 : index
    %6 = vector.load %arg3[%c0_4, %c0_5] : memref<1x128xf32, #tpu.memory_space<vmem>>, vector<1x128xf32>
    %7 = vector.shape_cast %6 : vector<1x128xf32> to vector<1x1x128xf32>
    %8 = vector.broadcast %7 : vector<1x1x128xf32> to vector<8x8x128xf32>
    %9 = arith.mulf %5, %8 : vector<8x8x128xf32>
    %c0_6 = arith.constant 0 : index
    %c0_7 = arith.constant 0 : index
    %10 = vector.load %arg4[%c0_6, %c0_7] : memref<1x128xf32, #tpu.memory_space<vmem>>, vector<1x128xf32>
    %11 = vector.shape_cast %10 : vector<1x128xf32> to vector<1x1x128xf32>
    %12 = vector.broadcast %11 : vector<1x1x128xf32> to vector<8x8x128xf32>
    %13 = arith.addf %9, %12 : vector<8x8x128xf32>
    %cst = arith.constant 0.000000e+00 : f32
    %14 = vector.broadcast %cst : f32 to vector<8x8x128xf32>
    %15 = arith.cmpf oge, %13, %14 : vector<8x8x128xf32>
    %cst_8 = arith.constant 2.000000e-01 : f32
    %16 = vector.broadcast %cst_8 : f32 to vector<8x8x128xf32>
    %17 = arith.mulf %16, %13 : vector<8x8x128xf32>
    %18 = arith.select %15, %13, %17 : vector<8x8x128xi1>, vector<8x8x128xf32>
    %cst_9 = arith.constant 0.000000e+00 : f32
    %19 = vector.broadcast %cst_9 : f32 to vector<10x10x128xf32>
    %c0_10 = arith.constant 0 : index
    %c0_11 = arith.constant 0 : index
    %c0_12 = arith.constant 0 : index
    %20 = vector.load %arg14[%c0_10, %c0_11, %c0_12] : memref<10x10x128xf32, #tpu.memory_space<vmem>>, vector<10x10x128xf32>
    tpu.vector_store %arg14[%c0_10, %c0_11, %c0_12], %19 {strides = array<i32>} : memref<10x10x128xf32, #tpu.memory_space<vmem>>, vector<10x10x128xf32>,
    %c1 = arith.constant 1 : index
    %c1_13 = arith.constant 1 : index
    %c0_14 = arith.constant 0 : index
    %21 = vector.load %arg14[%c1, %c1_13, %c0_14] : memref<10x10x128xf32, #tpu.memory_space<vmem>>, vector<8x8x128xf32>
    tpu.vector_store %arg14[%c1, %c1_13, %c0_14], %18 {strides = array<i32>} : memref<10x10x128xf32, #tpu.memory_space<vmem>>, vector<8x8x128xf32>,
    %cst_15 = arith.constant 0.000000e+00 : f32
    %22 = vector.broadcast %cst_15 : f32 to vector<64x128xf32>
    %c0_16 = arith.constant 0 : index
    %c0_17 = arith.constant 0 : index
    %23 = vector.load %arg15[%c0_16, %c0_17] : memref<64x128xf32, #tpu.memory_space<vmem>>, vector<64x128xf32>
    tpu.vector_store %arg15[%c0_16, %c0_17], %22 {strides = array<i32>} : memref<64x128xf32, #tpu.memory_space<vmem>>, vector<64x128xf32>,
    %c0_18 = arith.constant 0 : index
    %c0_19 = arith.constant 0 : index
    %c0_20 = arith.constant 0 : index
    %24 = vector.load %arg14[%c0_18, %c0_19, %c0_20] : memref<10x10x128xf32, #tpu.memory_space<vmem>>, vector<8x8x128xf32>
    %25 = vector.shape_cast %24 : vector<8x8x128xf32> to vector<64x128xf32>
    %26 = arith.truncf %25 : vector<64x128xf32> to vector<64x128xbf16>
    %c0_21 = arith.constant 0 : index
    %c0_22 = arith.constant 0 : index
    %27 = vector.load %arg15[%c0_21, %c0_22] : memref<64x128xf32, #tpu.memory_space<vmem>>, vector<64x128xf32>
    %c0_23 = arith.constant 0 : index
    %c0_24 = arith.constant 0 : index
    %c0_25 = arith.constant 0 : index
    %28 = vector.load %arg5[%c0_23, %c0_24, %c0_25] : memref<9x128x128xbf16, #tpu.memory_space<vmem>>, vector<1x128x128xbf16>
    %29 = vector.shape_cast %28 : vector<1x128x128xbf16> to vector<128x128xbf16>
    %cst_26 = arith.constant dense<0.000000e+00> : vector<64x128xf32>
    %30 = tpu.matmul %26, %29, %cst_26 {dimension_numbers = #tpu.dot_dimension_numbers<[1], [0], [0], [1], [0, 0, 1, 1], [], []>} : vector<64x128xbf16>, vector<128x128xbf16>, vector<64x128xf32> -> vector<64x128xf32>
    %31 = arith.addf %27, %30 : vector<64x128xf32>
    %c0_27 = arith.constant 0 : index
    %c0_28 = arith.constant 0 : index
    %32 = vector.load %arg15[%c0_27, %c0_28] : memref<64x128xf32, #tpu.memory_space<vmem>>, vector<64x128xf32>
    tpu.vector_store %arg15[%c0_27, %c0_28], %31 {strides = array<i32>} : memref<64x128xf32, #tpu.memory_space<vmem>>, vector<64x128xf32>,
    %c0_29 = arith.constant 0 : index
    %c1_30 = arith.constant 1 : index
    %c0_31 = arith.constant 0 : index
    %33 = vector.load %arg14[%c0_29, %c1_30, %c0_31] : memref<10x10x128xf32, #tpu.memory_space<vmem>>, vector<8x8x128xf32>
    %34 = vector.shape_cast %33 : vector<8x8x128xf32> to vector<64x128xf32>
    %35 = arith.truncf %34 : vector<64x128xf32> to vector<64x128xbf16>
    %c0_32 = arith.constant 0 : index
    %c0_33 = arith.constant 0 : index
    %36 = vector.load %arg15[%c0_32, %c0_33] : memref<64x128xf32, #tpu.memory_space<vmem>>, vector<64x128xf32>
    %c1_34 = arith.constant 1 : index
    %c0_35 = arith.constant 0 : index
    %c0_36 = arith.constant 0 : index
    %37 = vector.load %arg5[%c1_34, %c0_35, %c0_36] : memref<9x128x128xbf16, #tpu.memory_space<vmem>>, vector<1x128x128xbf16>
    %38 = vector.shape_cast %37 : vector<1x128x128xbf16> to vector<128x128xbf16>
    %cst_37 = arith.constant dense<0.000000e+00> : vector<64x128xf32>
    %39 = tpu.matmul %35, %38, %cst_37 {dimension_numbers = #tpu.dot_dimension_numbers<[1], [0], [0], [1], [0, 0, 1, 1], [], []>} : vector<64x128xbf16>, vector<128x128xbf16>, vector<64x128xf32> -> vector<64x128xf32>
    %40 = arith.addf %36, %39 : vector<64x128xf32>
    %c0_38 = arith.constant 0 : index
    %c0_39 = arith.constant 0 : index
    %41 = vector.load %arg15[%c0_38, %c0_39] : memref<64x128xf32, #tpu.memory_space<vmem>>, vector<64x128xf32>
    tpu.vector_store %arg15[%c0_38, %c0_39], %40 {strides = array<i32>} : memref<64x128xf32, #tpu.memory_space<vmem>>, vector<64x128xf32>,
    %c0_40 = arith.constant 0 : index
    %c2 = arith.constant 2 : index
    %c0_41 = arith.constant 0 : index
    %42 = vector.load %arg14[%c0_40, %c2, %c0_41] : memref<10x10x128xf32, #tpu.memory_space<vmem>>, vector<8x8x128xf32>
    %43 = vector.shape_cast %42 : vector<8x8x128xf32> to vector<64x128xf32>
    %44 = arith.truncf %43 : vector<64x128xf32> to vector<64x128xbf16>
    %c0_42 = arith.constant 0 : index
    %c0_43 = arith.constant 0 : index
    %45 = vector.load %arg15[%c0_42, %c0_43] : memref<64x128xf32, #tpu.memory_space<vmem>>, vector<64x128xf32>
    %c2_44 = arith.constant 2 : index
    %c0_45 = arith.constant 0 : index
    %c0_46 = arith.constant 0 : index
    %46 = vector.load %arg5[%c2_44, %c0_45, %c0_46] : memref<9x128x128xbf16, #tpu.memory_space<vmem>>, vector<1x128x128xbf16>
    %47 = vector.shape_cast %46 : vector<1x128x128xbf16> to vector<128x128xbf16>
    %cst_47 = arith.constant dense<0.000000e+00> : vector<64x128xf32>
    %48 = tpu.matmul %44, %47, %cst_47 {dimension_numbers = #tpu.dot_dimension_numbers<[1], [0], [0], [1], [0, 0, 1, 1], [], []>} : vector<64x128xbf16>, vector<128x128xbf16>, vector<64x128xf32> -> vector<64x128xf32>
    %49 = arith.addf %45, %48 : vector<64x128xf32>
    %c0_48 = arith.constant 0 : index
    %c0_49 = arith.constant 0 : index
    %50 = vector.load %arg15[%c0_48, %c0_49] : memref<64x128xf32, #tpu.memory_space<vmem>>, vector<64x128xf32>
    tpu.vector_store %arg15[%c0_48, %c0_49], %49 {strides = array<i32>} : memref<64x128xf32, #tpu.memory_space<vmem>>, vector<64x128xf32>,
    %c1_50 = arith.constant 1 : index
    %c0_51 = arith.constant 0 : index
    %c0_52 = arith.constant 0 : index
    %51 = vector.load %arg14[%c1_50, %c0_51, %c0_52] : memref<10x10x128xf32, #tpu.memory_space<vmem>>, vector<8x8x128xf32>
    %52 = vector.shape_cast %51 : vector<8x8x128xf32> to vector<64x128xf32>
    %53 = arith.truncf %52 : vector<64x128xf32> to vector<64x128xbf16>
    %c0_53 = arith.constant 0 : index
    %c0_54 = arith.constant 0 : index
    %54 = vector.load %arg15[%c0_53, %c0_54] : memref<64x128xf32, #tpu.memory_space<vmem>>, vector<64x128xf32>
    %c3 = arith.constant 3 : index
    %c0_55 = arith.constant 0 : index
    %c0_56 = arith.constant 0 : index
    %55 = vector.load %arg5[%c3, %c0_55, %c0_56] : memref<9x128x128xbf16, #tpu.memory_space<vmem>>, vector<1x128x128xbf16>
    %56 = vector.shape_cast %55 : vector<1x128x128xbf16> to vector<128x128xbf16>
    %cst_57 = arith.constant dense<0.000000e+00> : vector<64x128xf32>
    %57 = tpu.matmul %53, %56, %cst_57 {dimension_numbers = #tpu.dot_dimension_numbers<[1], [0], [0], [1], [0, 0, 1, 1], [], []>} : vector<64x128xbf16>, vector<128x128xbf16>, vector<64x128xf32> -> vector<64x128xf32>
    %58 = arith.addf %54, %57 : vector<64x128xf32>
    %c0_58 = arith.constant 0 : index
    %c0_59 = arith.constant 0 : index
    %59 = vector.load %arg15[%c0_58, %c0_59] : memref<64x128xf32, #tpu.memory_space<vmem>>, vector<64x128xf32>
    tpu.vector_store %arg15[%c0_58, %c0_59], %58 {strides = array<i32>} : memref<64x128xf32, #tpu.memory_space<vmem>>, vector<64x128xf32>,
    %c1_60 = arith.constant 1 : index
    %c1_61 = arith.constant 1 : index
    %c0_62 = arith.constant 0 : index
    %60 = vector.load %arg14[%c1_60, %c1_61, %c0_62] : memref<10x10x128xf32, #tpu.memory_space<vmem>>, vector<8x8x128xf32>
    %61 = vector.shape_cast %60 : vector<8x8x128xf32> to vector<64x128xf32>
    %62 = arith.truncf %61 : vector<64x128xf32> to vector<64x128xbf16>
    %c0_63 = arith.constant 0 : index
    %c0_64 = arith.constant 0 : index
    %63 = vector.load %arg15[%c0_63, %c0_64] : memref<64x128xf32, #tpu.memory_space<vmem>>, vector<64x128xf32>
    %c4 = arith.constant 4 : index
    %c0_65 = arith.constant 0 : index
    %c0_66 = arith.constant 0 : index
    %64 = vector.load %arg5[%c4, %c0_65, %c0_66] : memref<9x128x128xbf16, #tpu.memory_space<vmem>>, vector<1x128x128xbf16>
    %65 = vector.shape_cast %64 : vector<1x128x128xbf16> to vector<128x128xbf16>
    %cst_67 = arith.constant dense<0.000000e+00> : vector<64x128xf32>
    %66 = tpu.matmul %62, %65, %cst_67 {dimension_numbers = #tpu.dot_dimension_numbers<[1], [0], [0], [1], [0, 0, 1, 1], [], []>} : vector<64x128xbf16>, vector<128x128xbf16>, vector<64x128xf32> -> vector<64x128xf32>
    %67 = arith.addf %63, %66 : vector<64x128xf32>
    %c0_68 = arith.constant 0 : index
    %c0_69 = arith.constant 0 : index
    %68 = vector.load %arg15[%c0_68, %c0_69] : memref<64x128xf32, #tpu.memory_space<vmem>>, vector<64x128xf32>
    tpu.vector_store %arg15[%c0_68, %c0_69], %67 {strides = array<i32>} : memref<64x128xf32, #tpu.memory_space<vmem>>, vector<64x128xf32>,
    %c1_70 = arith.constant 1 : index
    %c2_71 = arith.constant 2 : index
    %c0_72 = arith.constant 0 : index
    %69 = vector.load %arg14[%c1_70, %c2_71, %c0_72] : memref<10x10x128xf32, #tpu.memory_space<vmem>>, vector<8x8x128xf32>
    %70 = vector.shape_cast %69 : vector<8x8x128xf32> to vector<64x128xf32>
    %71 = arith.truncf %70 : vector<64x128xf32> to vector<64x128xbf16>
    %c0_73 = arith.constant 0 : index
    %c0_74 = arith.constant 0 : index
    %72 = vector.load %arg15[%c0_73, %c0_74] : memref<64x128xf32, #tpu.memory_space<vmem>>, vector<64x128xf32>
    %c5 = arith.constant 5 : index
    %c0_75 = arith.constant 0 : index
    %c0_76 = arith.constant 0 : index
    %73 = vector.load %arg5[%c5, %c0_75, %c0_76] : memref<9x128x128xbf16, #tpu.memory_space<vmem>>, vector<1x128x128xbf16>
    %74 = vector.shape_cast %73 : vector<1x128x128xbf16> to vector<128x128xbf16>
    %cst_77 = arith.constant dense<0.000000e+00> : vector<64x128xf32>
    %75 = tpu.matmul %71, %74, %cst_77 {dimension_numbers = #tpu.dot_dimension_numbers<[1], [0], [0], [1], [0, 0, 1, 1], [], []>} : vector<64x128xbf16>, vector<128x128xbf16>, vector<64x128xf32> -> vector<64x128xf32>
    %76 = arith.addf %72, %75 : vector<64x128xf32>
    %c0_78 = arith.constant 0 : index
    %c0_79 = arith.constant 0 : index
    %77 = vector.load %arg15[%c0_78, %c0_79] : memref<64x128xf32, #tpu.memory_space<vmem>>, vector<64x128xf32>
    tpu.vector_store %arg15[%c0_78, %c0_79], %76 {strides = array<i32>} : memref<64x128xf32, #tpu.memory_space<vmem>>, vector<64x128xf32>,
    %c2_80 = arith.constant 2 : index
    %c0_81 = arith.constant 0 : index
    %c0_82 = arith.constant 0 : index
    %78 = vector.load %arg14[%c2_80, %c0_81, %c0_82] : memref<10x10x128xf32, #tpu.memory_space<vmem>>, vector<8x8x128xf32>
    %79 = vector.shape_cast %78 : vector<8x8x128xf32> to vector<64x128xf32>
    %80 = arith.truncf %79 : vector<64x128xf32> to vector<64x128xbf16>
    %c0_83 = arith.constant 0 : index
    %c0_84 = arith.constant 0 : index
    %81 = vector.load %arg15[%c0_83, %c0_84] : memref<64x128xf32, #tpu.memory_space<vmem>>, vector<64x128xf32>
    %c6 = arith.constant 6 : index
    %c0_85 = arith.constant 0 : index
    %c0_86 = arith.constant 0 : index
    %82 = vector.load %arg5[%c6, %c0_85, %c0_86] : memref<9x128x128xbf16, #tpu.memory_space<vmem>>, vector<1x128x128xbf16>
    %83 = vector.shape_cast %82 : vector<1x128x128xbf16> to vector<128x128xbf16>
    %cst_87 = arith.constant dense<0.000000e+00> : vector<64x128xf32>
    %84 = tpu.matmul %80, %83, %cst_87 {dimension_numbers = #tpu.dot_dimension_numbers<[1], [0], [0], [1], [0, 0, 1, 1], [], []>} : vector<64x128xbf16>, vector<128x128xbf16>, vector<64x128xf32> -> vector<64x128xf32>
    %85 = arith.addf %81, %84 : vector<64x128xf32>
    %c0_88 = arith.constant 0 : index
    %c0_89 = arith.constant 0 : index
    %86 = vector.load %arg15[%c0_88, %c0_89] : memref<64x128xf32, #tpu.memory_space<vmem>>, vector<64x128xf32>
    tpu.vector_store %arg15[%c0_88, %c0_89], %85 {strides = array<i32>} : memref<64x128xf32, #tpu.memory_space<vmem>>, vector<64x128xf32>,
    %c2_90 = arith.constant 2 : index
    %c1_91 = arith.constant 1 : index
    %c0_92 = arith.constant 0 : index
    %87 = vector.load %arg14[%c2_90, %c1_91, %c0_92] : memref<10x10x128xf32, #tpu.memory_space<vmem>>, vector<8x8x128xf32>
    %88 = vector.shape_cast %87 : vector<8x8x128xf32> to vector<64x128xf32>
    %89 = arith.truncf %88 : vector<64x128xf32> to vector<64x128xbf16>
    %c0_93 = arith.constant 0 : index
    %c0_94 = arith.constant 0 : index
    %90 = vector.load %arg15[%c0_93, %c0_94] : memref<64x128xf32, #tpu.memory_space<vmem>>, vector<64x128xf32>
    %c7 = arith.constant 7 : index
    %c0_95 = arith.constant 0 : index
    %c0_96 = arith.constant 0 : index
    %91 = vector.load %arg5[%c7, %c0_95, %c0_96] : memref<9x128x128xbf16, #tpu.memory_space<vmem>>, vector<1x128x128xbf16>
    %92 = vector.shape_cast %91 : vector<1x128x128xbf16> to vector<128x128xbf16>
    %cst_97 = arith.constant dense<0.000000e+00> : vector<64x128xf32>
    %93 = tpu.matmul %89, %92, %cst_97 {dimension_numbers = #tpu.dot_dimension_numbers<[1], [0], [0], [1], [0, 0, 1, 1], [], []>} : vector<64x128xbf16>, vector<128x128xbf16>, vector<64x128xf32> -> vector<64x128xf32>
    %94 = arith.addf %90, %93 : vector<64x128xf32>
    %c0_98 = arith.constant 0 : index
    %c0_99 = arith.constant 0 : index
    %95 = vector.load %arg15[%c0_98, %c0_99] : memref<64x128xf32, #tpu.memory_space<vmem>>, vector<64x128xf32>
    tpu.vector_store %arg15[%c0_98, %c0_99], %94 {strides = array<i32>} : memref<64x128xf32, #tpu.memory_space<vmem>>, vector<64x128xf32>,
    %c2_100 = arith.constant 2 : index
    %c2_101 = arith.constant 2 : index
    %c0_102 = arith.constant 0 : index
    %96 = vector.load %arg14[%c2_100, %c2_101, %c0_102] : memref<10x10x128xf32, #tpu.memory_space<vmem>>, vector<8x8x128xf32>
    %97 = vector.shape_cast %96 : vector<8x8x128xf32> to vector<64x128xf32>
    %98 = arith.truncf %97 : vector<64x128xf32> to vector<64x128xbf16>
    %c0_103 = arith.constant 0 : index
    %c0_104 = arith.constant 0 : index
    %99 = vector.load %arg15[%c0_103, %c0_104] : memref<64x128xf32, #tpu.memory_space<vmem>>, vector<64x128xf32>
    %c8 = arith.constant 8 : index
    %c0_105 = arith.constant 0 : index
    %c0_106 = arith.constant 0 : index
    %100 = vector.load %arg5[%c8, %c0_105, %c0_106] : memref<9x128x128xbf16, #tpu.memory_space<vmem>>, vector<1x128x128xbf16>
    %101 = vector.shape_cast %100 : vector<1x128x128xbf16> to vector<128x128xbf16>
    %cst_107 = arith.constant dense<0.000000e+00> : vector<64x128xf32>
    %102 = tpu.matmul %98, %101, %cst_107 {dimension_numbers = #tpu.dot_dimension_numbers<[1], [0], [0], [1], [0, 0, 1, 1], [], []>} : vector<64x128xbf16>, vector<128x128xbf16>, vector<64x128xf32> -> vector<64x128xf32>
    %103 = arith.addf %99, %102 : vector<64x128xf32>
    %c0_108 = arith.constant 0 : index
    %c0_109 = arith.constant 0 : index
    %104 = vector.load %arg15[%c0_108, %c0_109] : memref<64x128xf32, #tpu.memory_space<vmem>>, vector<64x128xf32>
    tpu.vector_store %arg15[%c0_108, %c0_109], %103 {strides = array<i32>} : memref<64x128xf32, #tpu.memory_space<vmem>>, vector<64x128xf32>,
    %c0_110 = arith.constant 0 : index
    %c0_111 = arith.constant 0 : index
    %105 = vector.load %arg15[%c0_110, %c0_111] : memref<64x128xf32, #tpu.memory_space<vmem>>, vector<64x128xf32>
    %106 = arith.truncf %105 : vector<64x128xf32> to vector<64x128xbf16>
    %c0_112 = arith.constant 0 : index
    %c0_113 = arith.constant 0 : index
    %c0_114 = arith.constant 0 : index
    %107 = vector.load %arg8[%c0_112, %c0_113, %c0_114] : memref<1x64x128xbf16, #tpu.memory_space<vmem>>, vector<1x64x128xbf16>
    %108 = vector.shape_cast %107 : vector<1x64x128xbf16> to vector<64x128xbf16>
    %109 = vector.shape_cast %106 : vector<64x128xbf16> to vector<1x64x128xbf16>
    tpu.vector_store %arg8[%c0_112, %c0_113, %c0_114], %109 {strides = array<i32>} : memref<1x64x128xbf16, #tpu.memory_space<vmem>>, vector<1x64x128xbf16>,
    %c0_115 = arith.constant 0 : index
    %c0_116 = arith.constant 0 : index
    %c0_117 = arith.constant 0 : index
    %110 = vector.load %arg10[%c0_115, %c0_116, %c0_117] : memref<1x1x128xf32, #tpu.memory_space<vmem>>, vector<1x1x128xf32>
    %111 = vector.shape_cast %110 : vector<1x1x128xf32> to vector<1x128xf32>
    %cst_118 = arith.constant dense<0.000000e+00> : vector<128xf32>
    %112 = vector.multi_reduction <add>, %105, %cst_118 [0] : vector<64x128xf32> to vector<128xf32>
    %113 = vector.shape_cast %112 : vector<128xf32> to vector<1x128xf32>
    %114 = arith.addf %111, %113 : vector<1x128xf32>
    %c0_119 = arith.constant 0 : index
    %c0_120 = arith.constant 0 : index
    %c0_121 = arith.constant 0 : index
    %115 = vector.load %arg10[%c0_119, %c0_120, %c0_121] : memref<1x1x128xf32, #tpu.memory_space<vmem>>, vector<1x1x128xf32>
    %116 = vector.shape_cast %115 : vector<1x1x128xf32> to vector<1x128xf32>
    %117 = vector.shape_cast %114 : vector<1x128xf32> to vector<1x1x128xf32>
    tpu.vector_store %arg10[%c0_119, %c0_120, %c0_121], %117 {strides = array<i32>} : memref<1x1x128xf32, #tpu.memory_space<vmem>>, vector<1x1x128xf32>,
    %c0_122 = arith.constant 0 : index
    %c0_123 = arith.constant 0 : index
    %c0_124 = arith.constant 0 : index
    %118 = vector.load %arg11[%c0_122, %c0_123, %c0_124] : memref<1x1x128xf32, #tpu.memory_space<vmem>>, vector<1x1x128xf32>
    %119 = vector.shape_cast %118 : vector<1x1x128xf32> to vector<1x128xf32>
    %120 = arith.mulf %105, %105 : vector<64x128xf32>
    %cst_125 = arith.constant dense<0.000000e+00> : vector<128xf32>
    %121 = vector.multi_reduction <add>, %120, %cst_125 [0] : vector<64x128xf32> to vector<128xf32>
    %122 = vector.shape_cast %121 : vector<128xf32> to vector<1x128xf32>
    %123 = arith.addf %119, %122 : vector<1x128xf32>
    %c0_126 = arith.constant 0 : index
    %c0_127 = arith.constant 0 : index
    %c0_128 = arith.constant 0 : index
    %124 = vector.load %arg11[%c0_126, %c0_127, %c0_128] : memref<1x1x128xf32, #tpu.memory_space<vmem>>, vector<1x1x128xf32>
    %125 = vector.shape_cast %124 : vector<1x1x128xf32> to vector<1x128xf32>
    %126 = vector.shape_cast %123 : vector<1x128xf32> to vector<1x1x128xf32>
    tpu.vector_store %arg11[%c0_126, %c0_127, %c0_128], %126 {strides = array<i32>} : memref<1x1x128xf32, #tpu.memory_space<vmem>>, vector<1x1x128xf32>,
    %c0_129 = arith.constant 0 : index
    %c0_130 = arith.constant 0 : index
    %c0_131 = arith.constant 0 : index
    %127 = vector.load %arg6[%c0_129, %c0_130, %c0_131] : memref<1x64x16xbf16, #tpu.memory_space<vmem>>, vector<1x64x16xbf16>
    %128 = vector.shape_cast %127 : vector<1x64x16xbf16> to vector<64x16xbf16>
    %c0_132 = arith.constant 0 : index
    %c0_133 = arith.constant 0 : index
    %129 = vector.load %arg7[%c0_132, %c0_133] : memref<16x128xbf16, #tpu.memory_space<vmem>>, vector<16x128xbf16>
    %cst_134 = arith.constant dense<0.000000e+00> : vector<64x128xf32>
    %130 = tpu.matmul %128, %129, %cst_134 {dimension_numbers = #tpu.dot_dimension_numbers<[1], [0], [0], [1], [0, 0, 1, 1], [], []>} : vector<64x16xbf16>, vector<16x128xbf16>, vector<64x128xf32> -> vector<64x128xf32>
    %131 = arith.truncf %130 : vector<64x128xf32> to vector<64x128xbf16>
    %c0_135 = arith.constant 0 : index
    %c0_136 = arith.constant 0 : index
    %c0_137 = arith.constant 0 : index
    %132 = vector.load %arg9[%c0_135, %c0_136, %c0_137] : memref<1x64x128xbf16, #tpu.memory_space<vmem>>, vector<1x64x128xbf16>
    %133 = vector.shape_cast %132 : vector<1x64x128xbf16> to vector<64x128xbf16>
    %134 = vector.shape_cast %131 : vector<64x128xbf16> to vector<1x64x128xbf16>
    tpu.vector_store %arg9[%c0_135, %c0_136, %c0_137], %134 {strides = array<i32>} : memref<1x64x128xbf16, #tpu.memory_space<vmem>>, vector<1x64x128xbf16>,
    %c0_138 = arith.constant 0 : index
    %c0_139 = arith.constant 0 : index
    %c0_140 = arith.constant 0 : index
    %135 = vector.load %arg12[%c0_138, %c0_139, %c0_140] : memref<1x1x128xf32, #tpu.memory_space<vmem>>, vector<1x1x128xf32>
    %136 = vector.shape_cast %135 : vector<1x1x128xf32> to vector<1x128xf32>
    %cst_141 = arith.constant dense<0.000000e+00> : vector<128xf32>
    %137 = vector.multi_reduction <add>, %130, %cst_141 [0] : vector<64x128xf32> to vector<128xf32>
    %138 = vector.shape_cast %137 : vector<128xf32> to vector<1x128xf32>
    %139 = arith.addf %136, %138 : vector<1x128xf32>
    %c0_142 = arith.constant 0 : index
    %c0_143 = arith.constant 0 : index
    %c0_144 = arith.constant 0 : index
    %140 = vector.load %arg12[%c0_142, %c0_143, %c0_144] : memref<1x1x128xf32, #tpu.memory_space<vmem>>, vector<1x1x128xf32>
    %141 = vector.shape_cast %140 : vector<1x1x128xf32> to vector<1x128xf32>
    %142 = vector.shape_cast %139 : vector<1x128xf32> to vector<1x1x128xf32>
    tpu.vector_store %arg12[%c0_142, %c0_143, %c0_144], %142 {strides = array<i32>} : memref<1x1x128xf32, #tpu.memory_space<vmem>>, vector<1x1x128xf32>,
    %c0_145 = arith.constant 0 : index
    %c0_146 = arith.constant 0 : index
    %c0_147 = arith.constant 0 : index
    %143 = vector.load %arg13[%c0_145, %c0_146, %c0_147] : memref<1x1x128xf32, #tpu.memory_space<vmem>>, vector<1x1x128xf32>
    %144 = vector.shape_cast %143 : vector<1x1x128xf32> to vector<1x128xf32>
    %145 = arith.mulf %130, %130 : vector<64x128xf32>
    %cst_148 = arith.constant dense<0.000000e+00> : vector<128xf32>
    %146 = vector.multi_reduction <add>, %145, %cst_148 [0] : vector<64x128xf32> to vector<128xf32>
    %147 = vector.shape_cast %146 : vector<128xf32> to vector<1x128xf32>
    %148 = arith.addf %144, %147 : vector<1x128xf32>
    %c0_149 = arith.constant 0 : index
    %c0_150 = arith.constant 0 : index
    %c0_151 = arith.constant 0 : index
    %149 = vector.load %arg13[%c0_149, %c0_150, %c0_151] : memref<1x1x128xf32, #tpu.memory_space<vmem>>, vector<1x1x128xf32>
    %150 = vector.shape_cast %149 : vector<1x1x128xf32> to vector<1x128xf32>
    %151 = vector.shape_cast %148 : vector<1x128xf32> to vector<1x1x128xf32>
    tpu.vector_store %arg13[%c0_149, %c0_150, %c0_151], %151 {strides = array<i32>} : memref<1x1x128xf32, #tpu.memory_space<vmem>>, vector<1x1x128xf32>,
    return
  }
  func.func @transform_0(%arg0: i32, %arg1: i32) -> (i32, i32, i32, i32) {
    %c1_i32 = arith.constant 1 : i32
    %0 = arith.muli %arg0, %c1_i32 : i32
    %1 = arith.addi %0, %arg1 : i32
    %c0_i32 = arith.constant 0 : i32
    %c0_i32_0 = arith.constant 0 : i32
    %c0_i32_1 = arith.constant 0 : i32
    %c0_i32_2 = arith.constant 0 : i32
    return %1, %c0_i32, %c0_i32_0, %c0_i32_1 : i32, i32, i32, i32
  }
  func.func @transform_1(%arg0: i32, %arg1: i32) -> (i32, i32) {
    %c0_i32 = arith.constant 0 : i32
    %c0_i32_0 = arith.constant 0 : i32
    %c0_i32_1 = arith.constant 0 : i32
    return %c0_i32, %c0_i32_0 : i32, i32
  }
  func.func @transform_2(%arg0: i32, %arg1: i32) -> (i32, i32) {
    %c0_i32 = arith.constant 0 : i32
    %c0_i32_0 = arith.constant 0 : i32
    %c0_i32_1 = arith.constant 0 : i32
    return %c0_i32, %c0_i32_0 : i32, i32
  }
  func.func @transform_3(%arg0: i32, %arg1: i32) -> (i32, i32, i32) {
    %c0_i32 = arith.constant 0 : i32
    %c0_i32_0 = arith.constant 0 : i32
    %c0_i32_1 = arith.constant 0 : i32
    %c0_i32_2 = arith.constant 0 : i32
    return %c0_i32, %c0_i32_0, %c0_i32_1 : i32, i32, i32
  }
  func.func @transform_4(%arg0: i32, %arg1: i32) -> (i32, i32, i32) {
    %c1_i32 = arith.constant 1 : i32
    %0 = arith.muli %arg0, %c1_i32 : i32
    %1 = arith.addi %0, %arg1 : i32
    %c0_i32 = arith.constant 0 : i32
    %c0_i32_0 = arith.constant 0 : i32
    %c0_i32_1 = arith.constant 0 : i32
    return %1, %c0_i32, %c0_i32_0 : i32, i32, i32
  }
  func.func @transform_5(%arg0: i32, %arg1: i32) -> (i32, i32) {
    %c0_i32 = arith.constant 0 : i32
    %c0_i32_0 = arith.constant 0 : i32
    %c0_i32_1 = arith.constant 0 : i32
    return %c0_i32, %c0_i32_0 : i32, i32
  }
  func.func @transform_6(%arg0: i32, %arg1: i32) -> (i32, i32, i32) {
    %c1_i32 = arith.constant 1 : i32
    %0 = arith.muli %arg0, %c1_i32 : i32
    %1 = arith.addi %0, %arg1 : i32
    %c0_i32 = arith.constant 0 : i32
    %c0_i32_0 = arith.constant 0 : i32
    %c0_i32_1 = arith.constant 0 : i32
    return %1, %c0_i32, %c0_i32_0 : i32, i32, i32
  }
  func.func @transform_7(%arg0: i32, %arg1: i32) -> (i32, i32, i32) {
    %c1_i32 = arith.constant 1 : i32
    %0 = arith.muli %arg0, %c1_i32 : i32
    %1 = arith.addi %0, %arg1 : i32
    %c0_i32 = arith.constant 0 : i32
    %c0_i32_0 = arith.constant 0 : i32
    %c0_i32_1 = arith.constant 0 : i32
    return %1, %c0_i32, %c0_i32_0 : i32, i32, i32
  }
  func.func @transform_8(%arg0: i32, %arg1: i32) -> (i32, i32, i32) {
    %c0_i32 = arith.constant 0 : i32
    %c0_i32_0 = arith.constant 0 : i32
    %c0_i32_1 = arith.constant 0 : i32
    return %arg0, %c0_i32, %c0_i32_0 : i32, i32, i32
  }
  func.func @transform_9(%arg0: i32, %arg1: i32) -> (i32, i32, i32) {
    %c0_i32 = arith.constant 0 : i32
    %c0_i32_0 = arith.constant 0 : i32
    %c0_i32_1 = arith.constant 0 : i32
    return %arg0, %c0_i32, %c0_i32_0 : i32, i32, i32
  }
  func.func @transform_10(%arg0: i32, %arg1: i32) -> (i32, i32, i32) {
    %c0_i32 = arith.constant 0 : i32
    %c0_i32_0 = arith.constant 0 : i32
    %c0_i32_1 = arith.constant 0 : i32
    return %arg0, %c0_i32, %c0_i32_0 : i32, i32, i32
  }
  func.func @transform_11(%arg0: i32, %arg1: i32) -> (i32, i32, i32) {
    %c0_i32 = arith.constant 0 : i32
    %c0_i32_0 = arith.constant 0 : i32
    %c0_i32_1 = arith.constant 0 : i32
    return %arg0, %c0_i32, %c0_i32_0 : i32, i32, i32
  }
}

module attributes {stable_mosaic.version = 11 : i64} {
  func.func @_bn_act_merge_kernel(%arg0: i32, %arg1: memref<32x128xbf16, #tpu.memory_space<vmem>>, %arg2: memref<32x128xbf16, #tpu.memory_space<vmem>>, %arg3: memref<1x128xf32, #tpu.memory_space<vmem>>, %arg4: memref<1x128xf32, #tpu.memory_space<vmem>>, %arg5: memref<1x128xf32, #tpu.memory_space<vmem>>, %arg6: memref<1x128xf32, #tpu.memory_space<vmem>>, %arg7: memref<32x8xf32, #tpu.memory_space<vmem>>) attributes {dimension_semantics = [#tpu.dimension_semantics<parallel>], iteration_bounds = array<i64: 4>, scalar_prefetch = 0 : i64, scratch_operands = 0 : i64, tpu.core_type = #tpu.core_type<tc>, window_params = [{transform_indices = @transform_0, window_bounds = array<i64: 32, 128>}, {transform_indices = @transform_1, window_bounds = array<i64: 32, 128>}, {pipeline_mode = #tpu.pipeline_mode<synchronous>, transform_indices = @transform_2, window_bounds = array<i64: 1, 128>}, {pipeline_mode = #tpu.pipeline_mode<synchronous>, transform_indices = @transform_3, window_bounds = array<i64: 1, 128>}, {pipeline_mode = #tpu.pipeline_mode<synchronous>, transform_indices = @transform_4, window_bounds = array<i64: 1, 128>}, {pipeline_mode = #tpu.pipeline_mode<synchronous>, transform_indices = @transform_5, window_bounds = array<i64: 1, 128>}, {transform_indices = @transform_6, window_bounds = array<i64: 32, 8>}]} {
    %c0 = arith.constant 0 : index
    %c0_0 = arith.constant 0 : index
    %0 = vector.load %arg1[%c0, %c0_0] : memref<32x128xbf16, #tpu.memory_space<vmem>>, vector<32x128xbf16>
    %1 = arith.extf %0 : vector<32x128xbf16> to vector<32x128xf32>
    %c0_1 = arith.constant 0 : index
    %c0_2 = arith.constant 0 : index
    %2 = vector.load %arg3[%c0_1, %c0_2] : memref<1x128xf32, #tpu.memory_space<vmem>>, vector<1x128xf32>
    %3 = vector.broadcast %2 : vector<1x128xf32> to vector<32x128xf32>
    %4 = arith.mulf %1, %3 : vector<32x128xf32>
    %c0_3 = arith.constant 0 : index
    %c0_4 = arith.constant 0 : index
    %5 = vector.load %arg4[%c0_3, %c0_4] : memref<1x128xf32, #tpu.memory_space<vmem>>, vector<1x128xf32>
    %6 = vector.broadcast %5 : vector<1x128xf32> to vector<32x128xf32>
    %7 = arith.addf %4, %6 : vector<32x128xf32>
    %cst = arith.constant 0.000000e+00 : f32
    %8 = vector.broadcast %cst : f32 to vector<32x128xf32>
    %9 = arith.cmpf oge, %7, %8 : vector<32x128xf32>
    %cst_5 = arith.constant 2.000000e-01 : f32
    %10 = vector.broadcast %cst_5 : f32 to vector<32x128xf32>
    %11 = arith.mulf %10, %7 : vector<32x128xf32>
    %12 = arith.select %9, %7, %11 : vector<32x128xi1>, vector<32x128xf32>
    %c0_6 = arith.constant 0 : index
    %c0_7 = arith.constant 0 : index
    %13 = vector.load %arg2[%c0_6, %c0_7] : memref<32x128xbf16, #tpu.memory_space<vmem>>, vector<32x128xbf16>
    %14 = arith.extf %13 : vector<32x128xbf16> to vector<32x128xf32>
    %c0_8 = arith.constant 0 : index
    %c0_9 = arith.constant 0 : index
    %15 = vector.load %arg5[%c0_8, %c0_9] : memref<1x128xf32, #tpu.memory_space<vmem>>, vector<1x128xf32>
    %16 = vector.broadcast %15 : vector<1x128xf32> to vector<32x128xf32>
    %17 = arith.mulf %14, %16 : vector<32x128xf32>
    %c0_10 = arith.constant 0 : index
    %c0_11 = arith.constant 0 : index
    %18 = vector.load %arg6[%c0_10, %c0_11] : memref<1x128xf32, #tpu.memory_space<vmem>>, vector<1x128xf32>
    %19 = vector.broadcast %18 : vector<1x128xf32> to vector<32x128xf32>
    %20 = arith.addf %17, %19 : vector<32x128xf32>
    %cst_12 = arith.constant 0.000000e+00 : f32
    %21 = vector.broadcast %cst_12 : f32 to vector<32x128xf32>
    %22 = arith.cmpf oge, %20, %21 : vector<32x128xf32>
    %cst_13 = arith.constant 2.000000e-01 : f32
    %23 = vector.broadcast %cst_13 : f32 to vector<32x128xf32>
    %24 = arith.mulf %23, %20 : vector<32x128xf32>
    %25 = arith.select %22, %20, %24 : vector<32x128xi1>, vector<32x128xf32>
    %26 = arith.addf %12, %25 : vector<32x128xf32>
    %cst_14 = arith.constant 5.000000e-01 : f32
    %27 = vector.broadcast %cst_14 : f32 to vector<32x128xf32>
    %28 = arith.mulf %26, %27 : vector<32x128xf32>
    %29 = vector.extract_strided_slice %28 {offsets = [0, 0], sizes = [32, 8], strides = [1, 1]} : vector<32x128xf32> to vector<32x8xf32>
    %c0_15 = arith.constant 0 : index
    %c0_16 = arith.constant 0 : index
    %30 = vector.load %arg7[%c0_15, %c0_16] : memref<32x8xf32, #tpu.memory_space<vmem>>, vector<32x8xf32>
    tpu.vector_store %arg7[%c0_15, %c0_16], %29 {strides = array<i32>} : memref<32x8xf32, #tpu.memory_space<vmem>>, vector<32x8xf32>,
    return
  }
  func.func @transform_0(%arg0: i32) -> (i32, i32) {
    %c0_i32 = arith.constant 0 : i32
    %c0_i32_0 = arith.constant 0 : i32
    return %arg0, %c0_i32 : i32, i32
  }
  func.func @transform_1(%arg0: i32) -> (i32, i32) {
    %c0_i32 = arith.constant 0 : i32
    %c0_i32_0 = arith.constant 0 : i32
    return %arg0, %c0_i32 : i32, i32
  }
  func.func @transform_2(%arg0: i32) -> (i32, i32) {
    %c0_i32 = arith.constant 0 : i32
    %c0_i32_0 = arith.constant 0 : i32
    %c0_i32_1 = arith.constant 0 : i32
    return %c0_i32, %c0_i32_0 : i32, i32
  }
  func.func @transform_3(%arg0: i32) -> (i32, i32) {
    %c0_i32 = arith.constant 0 : i32
    %c0_i32_0 = arith.constant 0 : i32
    %c0_i32_1 = arith.constant 0 : i32
    return %c0_i32, %c0_i32_0 : i32, i32
  }
  func.func @transform_4(%arg0: i32) -> (i32, i32) {
    %c0_i32 = arith.constant 0 : i32
    %c0_i32_0 = arith.constant 0 : i32
    %c0_i32_1 = arith.constant 0 : i32
    return %c0_i32, %c0_i32_0 : i32, i32
  }
  func.func @transform_5(%arg0: i32) -> (i32, i32) {
    %c0_i32 = arith.constant 0 : i32
    %c0_i32_0 = arith.constant 0 : i32
    %c0_i32_1 = arith.constant 0 : i32
    return %c0_i32, %c0_i32_0 : i32, i32
  }
  func.func @transform_6(%arg0: i32) -> (i32, i32) {
    %c0_i32 = arith.constant 0 : i32
    %c0_i32_0 = arith.constant 0 : i32
    return %arg0, %c0_i32 : i32, i32
  }
}

</mosaic_0001>

<bundles_post_ra>
// kernel: down_block_comp.3
= control target key start
LH: loop header
LB: loop body
LE: loop exit
PB: predicated region body
PF: predicated region fallthrough
CT: control target
= control target key end

     0   :  { %s665_s15 = smov 0   ;;  %s667_s16 = smov 0   ;;  %s748_s0 = inlined_call_operand.vmem [shape: bf16[128,64], index: 0, kind: input, shape index: {}]   ;;  %s749_s1 = inlined_call_operand.vmem [shape: bf16[64,128], index: 1, kind: input, shape index: {}]   ;;  %s750_s2 = inlined_call_operand.vmem [shape: bf16[128,128], index: 2, kind: output, shape index: {0}]   ;;  %s751_s3 = inlined_call_operand.vmem [shape: f32[2,1,128], index: 3, kind: output, shape index: {1}]   ;;  %s752_s4 = inlined_call_operand.vmem [shape: f32[2,1,128], index: 4, kind: output, shape index: {2}]  }
   0x1   :  { %s669_s17 = smov 0   ;;  %s671_s18 = smov 0  }
   0x2   :  { %s673_s19 = smov 0  }
   0x3 LB: > { %s24_s20 = sadd.s32 1, %s629_s17  ;;  %s27_s21 = sadd.s32 1, %s633_s18  ;;  %s637_s19 = sphi %s673_s19, %s15_s19   ;;  %s633_s18 = sphi %s671_s18, %s756_s18   ;;  %s629_s17 = sphi %s669_s17, %s755_s17   ;;  %s625_s16 = sphi %s667_s16, %s754_s16   ;;  %s621_s15 = sphi %s665_s15, %s753_s15  }
   0x4   : > { %p25_p0 = scmp.ge.s32.totalorder %s24_s20, 2  ;;  %p501_p1 = scmp.ge.s32.totalorder %s637_s19, 1 }
   0x5   : > { %p192_p2 = scmp.lt.s32.totalorder %s637_s19, 5 }
   0x6   : > { %s758_s20 = smov (%p25_p0, %s24_s20), 0  ;;  %s760_s21 = smov (!%p25_p0, %s27_s21), %s633_s18 }
   0x7   : > { %p193_p3 = pnand %p501_p1, %p192_p2  ;;  %p29_p4 = scmp.ge.s32.totalorder %s760_s21, 2 }
   0x8   : > { %s502_s22 = sshll.u32 (!%p193_p3), %s625_s16, 1  ;;  %p248_p5 = scmp.lt.s32.totalorder (!%p193_p3), %s625_s16, 1 }
   0x9   : > { %s762_s21 = smov (%p29_p4, %s760_s21), 0  ;;  %196 = sbr.rel (%p193_p3) target bundleno = 197 (0xc5), region = 28 }
   0xa   : > { %s229_s23 = sadd.s32 (!%p193_p3), %s621_s15, %s502_s22  ;;  %p508_p7 = scmp.ne.s32.totalorder (!%p193_p3), %s621_s15, 0 }
   0xb   : > { %s503_s24 = sshll.u32 (!%p193_p3), %s229_s23, 2 }
   0xc   : > { %p231_p6 = scmp.lt.s32.totalorder (!%p193_p3), %s503_s24, 15 }
   0xe   : > { %s764_s16 = smov (!%p248_p5, %s625_s16), 1  ;;  %s766_s24 = smov (!%p231_p6, %s503_s24), 15 }
   0xf   : > { %s698_s27 = scalar_lea.vmem %s751_s3, %s764_s16  ;;  %s703_s30 = scalar_lea.vmem %s752_s4, %s764_s16 }
  0x10   : > { %s504_s5 = sshll.u32 %s766_s24, 2  ;;  %258 = sbr.rel (%p508_p7) target bundleno = 24 (0x18), region = 32 }
  0x11   : > { %s234_s8 = scalar_lea.vmem %s748_s0, %s504_s5  ;;  %s711_s11 = scalar_lea.vmem %s750_s2, %s504_s5 }
  0x15   : > { %v639_v0 = vmov 0.0  }
  0x16   : > { %259 = vst [vmem:[%s698_s27] sm:$0x1] %v639_v0 }
  0x17   : > { %260 = vst [vmem:[%s703_s30] sm:$0x1] %v639_v0 }
  0x18 PF: > { %v542_v1 = vld [vmem:[%s749_s1 + $0x18] sm:$0xff]  ;;  %v541_v2 = vld [vmem:[%s749_s1 + $0x10] sm:$0xff]  ;;  %v540_v3 = vld [vmem:[%s749_s1 + $0x8] sm:$0xff]  ;;  %vm307_vm0 = vcmask 523264  }
  0x19   : > { %318 = vmatpush.bf16.msra.mxu0 %v542_v1  ;;  %554 = vmatpush.bf16.msra.mxu1 %v542_v1  ;;  %v539_v4 = vld [vmem:[%s749_s1] sm:$0xff]  ;;  %v538_v6 = vld [vmem:[%s234_s8 + $0x8] sm:$0xff] }
  0x1a   : > { %v537_v5 = vld [vmem:[%s234_s8] sm:$0xff] }
  0x1d   : > { %319 = vmatpush.bf16.msra.mxu0 %v541_v2  ;;  %555 = vmatpush.bf16.msra.mxu1 %v541_v2  ;;  %v341_v32 = vld [vmem:[%s698_s27] sm:$0x1] }
  0x1e   : > { %v353_v35 = vld [vmem:[%s703_s30] sm:$0x1] }
  0x21   : > { %320 = vmatpush.bf16.msra.mxu0 %v540_v3  ;;  %556 = vmatpush.bf16.msra.mxu1 %v540_v3 }
  0x25   : > { %321 = vmatpush.bf16.msra.mxu0 %v539_v4  ;;  %557 = vmatpush.bf16.msra.mxu1 %v539_v4 }
  0x28   : > { %533 = vmatmul.msk.bf16.vlgmr.msra.gmra.mxu0 %vm307_vm0, %v537_v5  ;;  %534 = vmatmul.msk.bf16.vlgmr.msra.gmra.mxu1 %vm307_vm0, %v538_v6 }
  0xa5   : > { %v323_v7 = vpop.f32.mrf.mxu0  ;;  %v328_v8 = vpop.f32.mrf.mxu1 }
  0xa6   : > { %v354_v9 = vmul.f32 %v323_v7, %v323_v7  ;;  %v356_v16 = vmul.f32 %v328_v8, %v328_v8 }
  0xad   : > { %v325_v10 = vpop.f32.mrf.mxu0  ;;  %v330_v11 = vpop.f32.mrf.mxu1 }
  0xae   : > { %v546_v12 = vpack.c.bf16 %v325_v10, %v323_v7  ;;  %v342_v13 = vadd.f32 %v325_v10, %v323_v7  ;;  %v355_v14 = vmul.f32 %v325_v10, %v325_v10  ;;  %v551_v15 = vpack.c.bf16 %v330_v11, %v328_v8 }
  0xaf   : > { %v357_v20 = vmul.f32 %v330_v11, %v330_v11 }
  0xb0   : > { %547 = vst [vmem:[%s711_s11] sm:$0xff] %v546_v12   ;;  %v358_v17 = vadd.f32 %v355_v14, %v354_v9  ;;  %v343_v18 = vadd.f32 %v342_v13, %v328_v8 }
  0xb1   : > { %553 = vst [vmem:[%s711_s11 + $0x8] sm:$0xff] %v551_v15  }
  0xb2   : > { %v344_v19 = vadd.f32 %v343_v18, %v330_v11  ;;  %v359_v21 = vadd.f32 %v358_v17, %v356_v16 }
  0xb4   : > { %v345_v22 = vrot.slane %v344_v19, 4  ;;  %v360_v23 = vadd.f32 %v359_v21, %v357_v20 }
  0xb6   : > { %v346_v24 = vadd.f32 %v345_v22, %v344_v19  ;;  %v361_v25 = vrot.slane %v360_v23, 4 }
  0xb8   : > { %v347_v26 = vrot.slane %v346_v24, 2  ;;  %v362_v27 = vadd.f32 %v361_v25, %v360_v23 }
  0xba   : > { %v348_v28 = vadd.f32 %v347_v26, %v346_v24  ;;  %v363_v29 = vrot.slane %v362_v27, 2 }
  0xbc   : > { %v349_v30 = vrot.slane %v348_v28, 1  ;;  %v364_v31 = vadd.f32 %v363_v29, %v362_v27 }
  0xbe   : > { %v350_v33 = vadd.f32 %v349_v30, %v348_v28  ;;  %v365_v34 = vrot.slane %v364_v31, 1 }
  0xc0   : > { %v351_v36 = vadd.f32 %v350_v33, %v341_v32  ;;  %v366_v37 = vadd.f32 %v365_v34, %v364_v31 }
  0xc2   : > { %352 = vst [vmem:[%s698_s27] sm:$0x1] %v351_v36  ;;  %v367_v38 = vadd.f32 %v366_v37, %v353_v35 }
  0xc4   : > { %368 = vst [vmem:[%s703_s30] sm:$0x1] %v367_v38 }
  0xc5 PF: > { %s15_s19 = sadd.s32 1, %s637_s19   ;;  %s753_s15 = smov %s629_s17 }
  0xc6   : > { %p12_p8 = scmp.ge.s32.totalorder %s15_s19, 6   ;;  %s754_s16 = smov %s633_s18 }
  0xc7   : > { %s755_s17 = smov %s758_s20  ;;  %s756_s18 = smov %s762_s21 }
  0xc8   :  { %14 = sbr.rel (!%p12_p8) target bundleno = 3 (0x3), region = 86 }

// kernel: down_block_comp.5
= control target key start
LH: loop header
LB: loop body
LE: loop exit
PB: predicated region body
PF: predicated region fallthrough
CT: control target
= control target key end

     0   :  { %s516_s21 = smov 0   ;;  %s556_s0 = inlined_call_operand.vmem [shape: bf16[128,128], index: 0, kind: input, shape index: {}]   ;;  %s557_s1 = inlined_call_operand.vmem [shape: bf16[128,128], index: 1, kind: input, shape index: {}]   ;;  %s558_s2 = inlined_call_operand.vmem [shape: f32[1,128], index: 2, kind: input, shape index: {}]   ;;  %s559_s3 = inlined_call_operand.vmem [shape: f32[1,128], index: 3, kind: input, shape index: {}]   ;;  %s560_s4 = inlined_call_operand.vmem [shape: f32[1,128], index: 4, kind: input, shape index: {}]   ;;  %s561_s5 = inlined_call_operand.vmem [shape: f32[1,128], index: 5, kind: input, shape index: {}]   ;;  %s562_s6 = inlined_call_operand.vmem [shape: f32[128,8], index: 6, kind: output, shape index: {}]  }
   0x1 LB: > { %s430_s22 = sadd.s32 4294967295, %s479_s21   ;;  %p434_p0 = scmp.ge.s32.totalorder %s479_s21, 1  ;;  %s479_s21 = sphi %s516_s21, %s16_s21  }
   0x2   : > { %p224_p1 = scmp.lt.s32.totalorder %s479_s21, 5 }
   0x4   : > { %p225_p2 = pnand %p434_p0, %p224_p1 }
   0x5   : > { %s435_s23 = sshll.u32 (!%p225_p2), %s430_s22, 2 }
   0x6   : > { %228 = sbr.rel (%p225_p2) target bundleno = 34 (0x22), region = 44  ;;  %p260_p3 = scmp.lt.s32.totalorder (!%p225_p2), %s435_s23, 15 }
   0xb   : > { %s564_s23 = smov (!%p260_p3, %s435_s23), 15  ;;  %v469_v0 = vld [vmem:[%s558_s2] ss:$0 sm:$0xff]  ;;  %vm357_vm0 = vcmask 64512  }
   0xc   : > { %s436_s24 = sshll.u32 %s564_s23, 2  ;;  %v471_v1 = vld [vmem:[%s560_s4] ss:$0 sm:$0xff]  ;;  %s440_s15 = sshll.u32 %s564_s23, 3 }
   0xd   : > { %s263_s27 = scalar_lea.vmem %s556_s0, %s436_s24  ;;  %s269_s30 = scalar_lea.vmem %s557_s1, %s436_s24  ;;  %v470_v9 = vld [vmem:[%s559_s3] ss:$0 sm:$0xff] }
   0xe   : > { %v444_v2 = vld [vmem:[%s263_s27] sm:$0xff]   ;;  %v459_v3 = vld [vmem:[%s263_s27 + $0x8] sm:$0xff]   ;;  %s275_s18 = scalar_lea.vmem %s562_s6, %s440_s15 }
   0xf   : > { %v452_v4 = vld [vmem:[%s269_s30] sm:$0xff]   ;;  %v445_v5 = vunpack.c.l.bf16 %v444_v2  ;;  %v446_v6 = vunpack.c.h.bf16 %v444_v2  ;;  %v449_v7 = vunpack.c.l.bf16 %v459_v3  ;;  %v450_v8 = vunpack.c.h.bf16 %v459_v3  ;;  %v460_v10 = vld [vmem:[%s269_s30 + $0x8] sm:$0xff]  }
  0x10   : > { %v453_v11 = vunpack.c.l.bf16 %v452_v4  ;;  %v454_v12 = vunpack.c.h.bf16 %v452_v4  ;;  %v457_v13 = vunpack.c.l.bf16 %v460_v10  ;;  %v458_v14 = vunpack.c.h.bf16 %v460_v10  ;;  %v472_v15 = vld [vmem:[%s561_s5] ss:$0 sm:$0xff] }
  0x11   : > { %v289_v16 = vmul.f32 %v469_v0, %v445_v5  ;;  %v290_v17 = vmul.f32 %v469_v0, %v446_v6  ;;  %v291_v18 = vmul.f32 %v469_v0, %v449_v7  ;;  %v292_v19 = vmul.f32 %v469_v0, %v450_v8 }
  0x12   : > { %v325_v20 = vmul.f32 %v471_v1, %v453_v11  ;;  %v326_v21 = vmul.f32 %v471_v1, %v454_v12  ;;  %v327_v22 = vmul.f32 %v471_v1, %v457_v13  ;;  %v328_v23 = vmul.f32 %v471_v1, %v458_v14 }
  0x13   : > { %v297_v24 = vadd.f32 %v470_v9, %v289_v16  ;;  %v298_v25 = vadd.f32 %v470_v9, %v290_v17  ;;  %v299_v26 = vadd.f32 %v470_v9, %v291_v18  ;;  %v300_v27 = vadd.f32 %v470_v9, %v292_v19 }
  0x14   : > { %v333_v28 = vadd.f32 %v472_v15, %v325_v20  ;;  %v334_v29 = vadd.f32 %v472_v15, %v326_v21  ;;  %v335_v30 = vadd.f32 %v472_v15, %v327_v22  ;;  %v336_v31 = vadd.f32 %v472_v15, %v328_v23 }
  0x15   : > { %vm301_vm1 = vcmp.ge.f32.partialorder %v297_v24, 0.0  ;;  %v305_v32 = vmul.f32 0.2, %v297_v24  ;;  %vm302_vm2 = vcmp.ge.f32.partialorder %v298_v25, 0.0  ;;  %v306_v33 = vmul.f32 0.2, %v298_v25 }
  0x16   : > { %vm337_vm3 = vcmp.ge.f32.partialorder %v333_v28, 0.0  ;;  %v341_v34 = vmul.f32 0.2, %v333_v28  ;;  %vm338_vm4 = vcmp.ge.f32.partialorder %v334_v29, 0.0  ;;  %v342_v35 = vmul.f32 0.2, %v334_v29 }
  0x17   : > { %v309_v36 = vsel %vm301_vm1, %v297_v24, %v305_v32  ;;  %v310_v37 = vsel %vm302_vm2, %v298_v25, %v306_v33  ;;  %vm303_vm5 = vcmp.ge.f32.partialorder %v299_v26, 0.0  ;;  %v307_v38 = vmul.f32 0.2, %v299_v26 }
  0x18   : > { %v345_v39 = vsel %vm337_vm3, %v333_v28, %v341_v34  ;;  %v346_v40 = vsel %vm338_vm4, %v334_v29, %v342_v35  ;;  %vm339_vm6 = vcmp.ge.f32.partialorder %v335_v30, 0.0  ;;  %v343_v41 = vmul.f32 0.2, %v335_v30 }
  0x19   : > { %v349_v42 = vadd.f32 %v345_v39, %v309_v36  ;;  %v350_v43 = vadd.f32 %v346_v40, %v310_v37  ;;  %v311_v44 = vsel %vm303_vm5, %v299_v26, %v307_v38  ;;  %vm304_vm7 = vcmp.ge.f32.partialorder %v300_v27, 0.0 }
  0x1a   : > { %v347_v45 = vsel %vm339_vm6, %v335_v30, %v343_v41  ;;  %v308_v46 = vmul.f32 0.2, %v300_v27  ;;  %vm340_vm8 = vcmp.ge.f32.partialorder %v336_v31, 0.0  ;;  %v344_v47 = vmul.f32 0.2, %v336_v31 }
  0x1b   : > { %v353_v48 = vmul.f32 0.5, %v349_v42  ;;  %v354_v49 = vmul.f32 0.5, %v350_v43  ;;  %v351_v50 = vadd.f32 %v347_v45, %v311_v44 }
  0x1c   : > { %v312_v51 = vsel %vm304_vm7, %v300_v27, %v308_v46  ;;  %v348_v52 = vsel %vm340_vm8, %v336_v31, %v344_v47 }
  0x1d   : > { %358 = vst.msk [vmem:[%s275_s18] sm:$0xff] %vm357_vm0, %v353_v48  ;;  %v355_v53 = vmul.f32 0.5, %v351_v50  ;;  %v352_v54 = vadd.f32 %v348_v52, %v312_v51 }
  0x1e   : > { %359 = vst.msk [vmem:[%s275_s18 + $0x8] sm:$0xff] %vm357_vm0, %v354_v49 }
  0x1f   : > { %360 = vst.msk [vmem:[%s275_s18 + $0x10] sm:$0xff] %vm357_vm0, %v355_v53  ;;  %v356_v55 = vmul.f32 0.5, %v352_v54 }
  0x21   : > { %361 = vst.msk [vmem:[%s275_s18 + $0x18] sm:$0xff] %vm357_vm0, %v356_v55 }
  0x22 PF: > { %s16_s21 = sadd.s32 1, %s479_s21  }
  0x23   : > { %p13_p4 = scmp.ge.s32.totalorder %s16_s21, 6  }
  0x25   :  { %15 = sbr.rel (!%p13_p4) target bundleno = 1 (0x1), region = 77 }

// kernel: down_block_comp.4
= control target key start
LH: loop header
LB: loop body
LE: loop exit
PB: predicated region body
PF: predicated region fallthrough
CT: control target
= control target key end

     0   :  { %s2910_s17 = smov 0   ;;  %s2912_s18 = smov 0   ;;  %s3428_s0 = inlined_call_operand.vmem [shape: bf16[2,8,8,128], index: 0, kind: input, shape index: {}]   ;;  %s3429_s1 = inlined_call_operand.vmem [shape: f32[1,128], index: 1, kind: input, shape index: {}]   ;;  %s3430_s2 = inlined_call_operand.vmem [shape: f32[1,128], index: 2, kind: input, shape index: {}]   ;;  %s3431_s3 = inlined_call_operand.vmem [shape: bf16[9,128,128], index: 3, kind: input, shape index: {}]   ;;  %s3432_s4 = inlined_call_operand.vmem [shape: bf16[2,64,16], index: 4, kind: input, shape index: {}]   ;;  %s3433_s5 = inlined_call_operand.vmem [shape: bf16[16,128], index: 5, kind: input, shape index: {}]   ;;  %s3434_s6 = inlined_call_operand.vmem [shape: bf16[2,64,128], index: 6, kind: output, shape index: {0}]   ;;  %s3435_s7 = inlined_call_operand.vmem [shape: bf16[2,64,128], index: 7, kind: output, shape index: {1}]   ;;  %s3436_s8 = inlined_call_operand.vmem [shape: f32[2,1,128], index: 8, kind: output, shape index: {2}]   ;;  %s3437_s9 = inlined_call_operand.vmem [shape: f32[2,1,128], index: 9, kind: output, shape index: {3}]   ;;  %s3438_s10 = inlined_call_operand.vmem [shape: f32[2,1,128], index: 10, kind: output, shape index: {4}]   ;;  %s3439_s11 = inlined_call_operand.vmem [shape: f32[2,1,128], index: 11, kind: output, shape index: {5}]  }
   0x1   :  { %s2914_s19 = smov 0  }
   0x2 LB: > { %s34_s20 = sadd.s32 1, %s2843_s18  ;;  %p2185_p0 = scmp.ge.s32.totalorder %s2847_s19, 1  ;;  %s2847_s19 = sphi %s2914_s19, %s22_s19   ;;  %s2843_s18 = sphi %s2912_s18, %s3441_s18   ;;  %s2839_s17 = sphi %s2910_s17, %s3440_s17  }
   0x3   : > { %p36_p1 = scmp.ge.s32.totalorder %s34_s20, 2  ;;  %p382_p2 = scmp.lt.s32.totalorder %s2847_s19, 3 }
   0x5   : > { %s3443_s20 = smov (%p36_p1, %s34_s20), 0  ;;  %p383_p3 = pnand %p2185_p0, %p382_p2 }
   0x6   : > { %p449_p4 = scmp.lt.s32.totalorder (!%p383_p3), %s2839_s17, 1 }
   0x7   : > { %386 = sbr.rel (%p383_p3) target bundleno = 355 (0x163), region = 44 }
   0xc   : > { %v2647_v0 = vld [vmem:[%s3431_s3 + $0x38] sm:$0xff]  ;;  %v2849_v2 = vmov 0.0   ;;  %v2646_v3 = vld [vmem:[%s3431_s3 + $0x30] sm:$0xff]  ;;  %s3445_s17 = smov (!%p449_p4, %s2839_s17), 1  ;;  %v2645_v5 = vld [vmem:[%s3431_s3 + $0x28] sm:$0xff]  ;;  %vm1868_vm8 = vcmask 130048  }
   0xd   : > { %v2655_v1 = vld [vmem:[%s3431_s3 + $0x78] sm:$0xff]  ;;  %569 = vst [vmem:[#allocation2 + $0x40] sm:$0xff] %v2849_v2  ;;  %2782 = vmatpush.bf16.msra.mxu2 %v2647_v0  ;;  %v2654_v4 = vld [vmem:[%s3431_s3 + $0x70] sm:$0xff]  ;;  %682 = vmatpush.bf16.msra.mxu0 %v2647_v0  ;;  %s2949_s12 = sshll.u32 %s3445_s17, 5  ;;  %v2653_v6 = vld [vmem:[%s3431_s3 + $0x68] sm:$0xff]  ;;  %s3333_s25 = scalar_lea.vmem %s3438_s10, %s3445_s17 }
   0xe   : > { %812 = vmatpush.bf16.msra.mxu1 %v2655_v1  ;;  %570 = vst [vmem:[#allocation2 + $0x48] sm:$0x3] %v2849_v2  ;;  %2790 = vmatpush.bf16.msra.mxu3 %v2655_v1  ;;  %s2959_s21 = scalar_lea.vmem %s3428_s0, %s2949_s12  ;;  %v2964_v7 = vld [vmem:[%s3429_s1] ss:$0 sm:$0xff]  ;;  %v2643_v33 = vld [vmem:[%s3431_s3 + $0x18] sm:$0xff]  ;;  %v2642_v43 = vld [vmem:[%s3431_s3 + $0x10] sm:$0xff]  ;;  %s3306_s22 = scalar_lea.vmem %s3432_s4, %s2949_s12 }
   0xf   : > { %571 = vst [vmem:[#allocation2 + $0x50] sm:$0xff] %v2849_v2  ;;  %v2773_v8 = vld [vmem:[%s2959_s21 + $0x8] sm:$0xff]   ;;  %v2774_v9 = vld [vmem:[%s2959_s21 + $0x10] sm:$0xff]   ;;  %v2973_v12 = vld [vmem:[%s3430_s2] ss:$0 sm:$0xff]  ;;  %s3339_s28 = scalar_lea.vmem %s3439_s11, %s3445_s17  ;;  %s3351_s13 = scalar_lea.vmem %s3436_s8, %s3445_s17 }
  0x10   : > { %572 = vst [vmem:[#allocation2 + $0x58] sm:$0x3] %v2849_v2  ;;  %v2724_v10 = vunpack.c.h.bf16 %v2773_v8  ;;  %v2727_v11 = vunpack.c.l.bf16 %v2774_v9  ;;  %v2718_v13 = vld [vmem:[%s2959_s21] sm:$0xff]   ;;  %v2728_v14 = vunpack.c.h.bf16 %v2774_v9  ;;  %v2723_v17 = vunpack.c.l.bf16 %v2773_v8  ;;  %v2994_v26 = vld [vmem:[%s2959_s21 + $0x18] sm:$0xff]   ;;  %v2650_v44 = vld [vmem:[%s3431_s3 + $0x50] sm:$0xff]  ;;  %s3357_s16 = scalar_lea.vmem %s3437_s9, %s3445_s17  ;;  %s3393_s26 = scalar_lea.vmem %s3434_s6, %s2949_s12 }
  0x11   : > { %561 = vst [vmem:[#allocation2] sm:$0xff] %v2849_v2  ;;  %2783 = vmatpush.bf16.msra.mxu2 %v2646_v3  ;;  %683 = vmatpush.bf16.msra.mxu0 %v2646_v3  ;;  %v2719_v15 = vunpack.c.l.bf16 %v2718_v13  ;;  %v2720_v16 = vunpack.c.h.bf16 %v2718_v13  ;;  %v2644_v20 = vld [vmem:[%s3431_s3 + $0x20] sm:$0xff]  ;;  %v2731_v28 = vunpack.c.l.bf16 %v2994_v26  ;;  %v2651_v34 = vld [vmem:[%s3431_s3 + $0x58] sm:$0xff]  ;;  %v2641_v50 = vld [vmem:[%s3431_s3 + $0x8] sm:$0xff] }
  0x12   : > { %813 = vmatpush.bf16.msra.mxu1 %v2654_v4  ;;  %562 = vst [vmem:[#allocation2 + $0x8] sm:$0x3] %v2849_v2  ;;  %2791 = vmatpush.bf16.msra.mxu3 %v2654_v4  ;;  %v520_v18 = vmul.f32 %v2964_v7, %v2724_v10  ;;  %v521_v19 = vmul.f32 %v2964_v7, %v2727_v11  ;;  %v2652_v21 = vld [vmem:[%s3431_s3 + $0x60] sm:$0xff]  ;;  %v2649_v51 = vld [vmem:[%s3431_s3 + $0x48] sm:$0xff]  ;;  %v2663_v61 = vld [vmem:[%s3431_s3 + $0xb8] sm:$0xff] }
  0x13   : > { %563 = vst [vmem:[#allocation2 + $0x10] sm:$0xff] %v2849_v2  ;;  %v517_v22 = vmul.f32 %v2964_v7, %v2719_v15  ;;  %v522_v23 = vmul.f32 %v2964_v7, %v2728_v14  ;;  %v518_v29 = vmul.f32 %v2964_v7, %v2720_v16  ;;  %v519_v30 = vmul.f32 %v2964_v7, %v2723_v17  ;;  %v2640_v55 = vld [vmem:[%s3431_s3] sm:$0xff]  ;;  %v2671_v62 = vld [vmem:[%s3431_s3 + $0xf8] sm:$0xff]  ;;  %v2662_v8 = vld [vmem:[%s3431_s3 + $0xb0] sm:$0xff] }
  0x14   : > { %564 = vst [vmem:[#allocation2 + $0x18] sm:$0x3] %v2849_v2  ;;  %v532_v24 = vadd.f32 %v2973_v12, %v520_v18  ;;  %v533_v25 = vadd.f32 %v2973_v12, %v521_v19  ;;  %v523_v35 = vmul.f32 %v2964_v7, %v2731_v28  ;;  %v2648_v56 = vld [vmem:[%s3431_s3 + $0x40] sm:$0xff]  ;;  %v2687_v3 = vld [vmem:[%s3431_s3 + $0x178] sm:$0xff]  ;;  %v2670_v9 = vld [vmem:[%s3431_s3 + $0xf0] sm:$0xff] }
  0x15   : > { %565 = vst [vmem:[#allocation2 + $0x20] sm:$0xff] %v2849_v2  ;;  %2784 = vmatpush.bf16.msra.mxu2 %v2645_v5  ;;  %684 = vmatpush.bf16.msra.mxu0 %v2645_v5  ;;  %v529_v27 = vadd.f32 %v2973_v12, %v517_v22  ;;  %v534_v36 = vadd.f32 %v2973_v12, %v522_v23  ;;  %v2686_v10 = vld [vmem:[%s3431_s3 + $0x170] sm:$0xff]  ;;  %v2661_v13 = vld [vmem:[%s3431_s3 + $0xa8] sm:$0xff]  ;;  %v2660_v17 = vld [vmem:[%s3431_s3 + $0xa0] sm:$0xff] }
  0x16   : > { %814 = vmatpush.bf16.msra.mxu1 %v2653_v6  ;;  %566 = vst [vmem:[#allocation2 + $0x28] sm:$0x3] %v2849_v2  ;;  %2792 = vmatpush.bf16.msra.mxu3 %v2653_v6  ;;  %vm540_vm0 = vcmp.ge.f32.partialorder %v532_v24, 0.0  ;;  %vm541_vm1 = vcmp.ge.f32.partialorder %v533_v25, 0.0  ;;  %v548_v31 = vmul.f32 0.2, %v532_v24  ;;  %v535_v39 = vadd.f32 %v2973_v12, %v523_v35 }
  0x17   : > { %567 = vst [vmem:[#allocation2 + $0x30] sm:$0xff] %v2849_v2  ;;  %v549_v32 = vmul.f32 0.2, %v533_v25  ;;  %v530_v40 = vadd.f32 %v2973_v12, %v518_v29  ;;  %v545_v41 = vmul.f32 0.2, %v529_v27  ;;  %v531_v42 = vadd.f32 %v2973_v12, %v519_v30  ;;  %v2679_v6 = vld [vmem:[%s3431_s3 + $0x138] sm:$0xff] }
  0x18   : > { %568 = vst [vmem:[#allocation2 + $0x38] sm:$0x3] %v2849_v2  ;;  %v3010_v37 = vsel %vm540_vm0, %v532_v24, %v548_v31  ;;  %vm537_vm2 = vcmp.ge.f32.partialorder %v529_v27, 0.0  ;;  %v550_v45 = vmul.f32 0.2, %v534_v36  ;;  %vm542_vm3 = vcmp.ge.f32.partialorder %v534_v36, 0.0 }
  0x19   : > { %2785 = vmatpush.bf16.msra.mxu2 %v2644_v20  ;;  %573 = vst [vmem:[#allocation2 + $0x60] sm:$0xff] %v2849_v2  ;;  %685 = vmatpush.bf16.msra.mxu0 %v2644_v20  ;;  %v3012_v38 = vsel %vm541_vm1, %v533_v25, %v549_v32  ;;  %v551_v46 = vmul.f32 0.2, %v535_v39  ;;  %vm543_vm4 = vcmp.ge.f32.partialorder %v535_v39, 0.0  ;;  %v546_v47 = vmul.f32 0.2, %v530_v40 }
  0x1a   : > { %815 = vmatpush.bf16.msra.mxu1 %v2652_v21  ;;  %2793 = vmatpush.bf16.msra.mxu3 %v2652_v21  ;;  %574 = vst [vmem:[#allocation2 + $0x68] sm:$0x3] %v2849_v2  ;;  %v3030_v48 = vsel %vm537_vm2, %v529_v27, %v545_v41  ;;  %vm538_vm5 = vcmp.ge.f32.partialorder %v530_v40, 0.0  ;;  %v547_v49 = vmul.f32 0.2, %v531_v42  ;;  %v3039_v52 = vsel %vm542_vm3, %v534_v36, %v550_v45  ;;  %v727_v60 = vld [vmem:[#allocation2 + $0x1] sm:$0xff] }
  0x1b   : > { %585 = vst [vmem:[#allocation2 + $0x41] sm:$0xff] %v3010_v37  ;;  %vm539_vm6 = vcmp.ge.f32.partialorder %v531_v42, 0.0  ;;  %v3043_v53 = vsel %vm543_vm4, %v535_v39, %v551_v46  ;;  %v3046_v54 = vsel %vm538_vm5, %v530_v40, %v546_v47  ;;  %v735_v0 = vpack.c.bf16 %v3030_v48, %v727_v60  ;;  %v2678_v11 = vld [vmem:[%s3431_s3 + $0x130] sm:$0xff]  ;;  %v2669_v14 = vld [vmem:[%s3431_s3 + $0xe8] sm:$0xff]  ;;  %v2668_v18 = vld [vmem:[%s3431_s3 + $0xe0] sm:$0xff] }
  0x1c   : > { %586 = vst [vmem:[#allocation2 + $0x51] sm:$0xff] %v3012_v38  ;;  %v3055_v57 = vsel %vm539_vm6, %v531_v42, %v547_v49  ;;  %v3077_v1 = vpack.c.bf16 %v3012_v38, %v3010_v37  ;;  %v2685_v15 = vld [vmem:[%s3431_s3 + $0x168] sm:$0xff]  ;;  %v2684_v19 = vld [vmem:[%s3431_s3 + $0x160] sm:$0xff]  ;;  %v2659_v23 = vld [vmem:[%s3431_s3 + $0x98] sm:$0xff]  ;;  %v3148_v29 = vpack.c.bf16 %v3043_v53, %v3039_v52 }
  0x1d   : > { %2786 = vmatpush.bf16.msra.mxu2 %v2643_v33  ;;  %575 = vst [vmem:[#allocation2 + $0x70] sm:$0xff] %v2849_v2  ;;  %686 = vmatpush.bf16.msra.mxu0 %v2643_v33  ;;  %v2677_v16 = vld [vmem:[%s3431_s3 + $0x128] sm:$0xff]  ;;  %v2676_v22 = vld [vmem:[%s3431_s3 + $0x120] sm:$0xff]  ;;  %v3144_v28 = vpack.c.bf16 %v3055_v57, %v3046_v54  ;;  %v2683_v30 = vld [vmem:[%s3431_s3 + $0x158] sm:$0xff] }
  0x1e   : > { %816 = vmatpush.bf16.msra.mxu1 %v2651_v34  ;;  %2794 = vmatpush.bf16.msra.mxu3 %v2651_v34  ;;  %576 = vst [vmem:[#allocation2 + $0x78] sm:$0x3] %v2849_v2  ;;  %v2667_v31 = vld [vmem:[%s3431_s3 + $0xd8] sm:$0xff]  ;;  %v2658_v34 = vld [vmem:[%s3431_s3 + $0x90] sm:$0xff]  ;;  %v2657_v40 = vld [vmem:[%s3431_s3 + $0x88] sm:$0xff] }
  0x1f   : > { %577 = vst [vmem:[#allocation2 + $0x80] sm:$0xff] %v2849_v2  ;;  %v2675_v33 = vld [vmem:[%s3431_s3 + $0x118] sm:$0xff]  ;;  %v2682_v35 = vld [vmem:[%s3431_s3 + $0x150] sm:$0xff]  ;;  %v2681_v41 = vld [vmem:[%s3431_s3 + $0x148] sm:$0xff] }
  0x20   : > { %578 = vst [vmem:[#allocation2 + $0x88] sm:$0x3] %v2849_v2  ;;  %v2666_v36 = vld [vmem:[%s3431_s3 + $0xd0] sm:$0xff]  ;;  %v2665_v42 = vld [vmem:[%s3431_s3 + $0xc8] sm:$0xff]  ;;  %v2680_v45 = vld [vmem:[%s3431_s3 + $0x140] sm:$0xff] }
  0x21   : > { %2787 = vmatpush.bf16.msra.mxu2 %v2642_v43  ;;  %579 = vst [vmem:[#allocation2 + $0x90] sm:$0xff] %v2849_v2  ;;  %687 = vmatpush.bf16.msra.mxu0 %v2642_v43  ;;  %v2674_v39 = vld [vmem:[%s3431_s3 + $0x110] sm:$0xff]  ;;  %v2673_v43 = vld [vmem:[%s3431_s3 + $0x108] sm:$0xff]  ;;  %v2695_v46 = vld [vmem:[%s3431_s3 + $0x1b8] sm:$0xff] }
  0x22   : > { %817 = vmatpush.bf16.msra.mxu1 %v2650_v44  ;;  %2795 = vmatpush.bf16.msra.mxu3 %v2650_v44  ;;  %580 = vst [vmem:[#allocation2 + $0x98] sm:$0x3] %v2849_v2  ;;  %v3057_v58 = vld [vmem:[#allocation2 + $0x40] sm:$0xff]  ;;  %v2703_v60 = vld [vmem:[%s3431_s3 + $0x1f8] sm:$0xff] }
  0x23   : > { %582 = vst [vmem:[#allocation2 + $0x11] sm:$0xff] %v3030_v48  ;;  %v3059_v59 = vld [vmem:[#allocation2 + $0x50] sm:$0xff]  ;;  %v2656_v44 = vld [vmem:[%s3431_s3 + $0x80] sm:$0xff] }
  0x24   : > { %587 = vst [vmem:[#allocation2 + $0x61] sm:$0xff] %v3039_v52  ;;  %v3072_v63 = vpack.c.bf16 %v3059_v59, %v3057_v58  ;;  %v857_v47 = vld [vmem:[#allocation2 + $0x2] sm:$0xff] }
  0x25   : > { %2788 = vmatpush.bf16.msra.mxu2 %v2641_v50  ;;  %588 = vst [vmem:[#allocation2 + $0x71] sm:$0xff] %v3043_v53  ;;  %688 = vmatpush.bf16.msra.mxu0 %v2641_v50 }
  0x26   : > { %818 = vmatpush.bf16.msra.mxu1 %v2649_v51  ;;  %2796 = vmatpush.bf16.msra.mxu3 %v2649_v51  ;;  %583 = vst [vmem:[#allocation2 + $0x21] sm:$0xff] %v3046_v54  ;;  %v2664_v51 = vld [vmem:[%s3431_s3 + $0xc0] sm:$0xff] }
  0x27   : > { %584 = vst [vmem:[#allocation2 + $0x31] sm:$0xff] %v3055_v57 }
  0x28   : > { %495 = vst [vmem:[%s3333_s25] sm:$0x1] %v2849_v2 }
  0x29   : > { %2789 = vmatpush.bf16.msra.mxu2 %v2640_v55  ;;  %689 = vmatpush.bf16.msra.mxu0 %v2640_v55  ;;  %v2716_v55 = vld [vmem:[%s3433_s5] sm:$0xff]  ;;  %496 = vst [vmem:[%s3339_s28] sm:$0x1] %v2849_v2 }
  0x2a   : > { %819 = vmatpush.bf16.msra.mxu1 %v2648_v56  ;;  %2797 = vmatpush.bf16.msra.mxu3 %v2648_v56  ;;  %v3082_v4 = vld [vmem:[#allocation2 + $0x10] sm:$0xff]  ;;  %v2672_v56 = vld [vmem:[%s3431_s3 + $0x100] sm:$0xff]  ;;  %493 = vst [vmem:[%s3351_s13] sm:$0x1] %v2849_v2 }
  0x2b   : > { %v606_v5 = vpack.c.bf16 %v3082_v4, %v2849_v2  ;;  %v3124_v20 = vld [vmem:[#allocation2 + $0x60] sm:$0xff]  ;;  %v858_v49 = vld [vmem:[#allocation2 + $0x12] sm:$0xff]  ;;  %494 = vst [vmem:[%s3357_s16] sm:$0x1] %v2849_v2 }
  0x2c   : > { %700 = vmatmul.bf16.vlgmr.msra.gmra.mxu2 %v3072_v63  ;;  %v3126_v21 = vld [vmem:[#allocation2 + $0x70] sm:$0xff] }
  0x2d   : > { %942 = vmatpush.bf16.msrb.mxu2 %v2663_v61  ;;  %820 = vmatmul.bf16.vlgmr.msra.gmra.mxu1 %v735_v0  ;;  %v3134_v24 = vld [vmem:[#allocation2 + $0x20] sm:$0xff]  ;;  %v3140_v27 = vpack.c.bf16 %v3126_v21, %v3124_v20  ;;  %v865_v61 = vpack.c.bf16 %v858_v49, %v857_v47 }
  0x2e   : > { %1072 = vmatpush.bf16.msrb.mxu3 %v2671_v62  ;;  %1332 = vmatpush.bf16.msrb.mxu1 %v2687_v3  ;;  %v3136_v25 = vld [vmem:[#allocation2 + $0x30] sm:$0xff]  ;;  %v1248_v50 = vld [vmem:[#allocation2 + $0x22] sm:$0xff]  ;;  %v995_v0 = vpack.c.bf16 %v3134_v24, %v3082_v4  ;;  %v2711_v4 = vld [vmem:[%s3431_s3 + $0x238] sm:$0xff] }
  0x2f   : > { %830 = vmatmul.bf16.vlgmr.msra.gmra.mxu3 %v3077_v1  ;;  %690 = vmatmul.bf16.vlgmr.msra.gmra.mxu0 %v606_v5  ;;  %v3158_v32 = vpack.c.bf16 %v3136_v25, %v3134_v24  ;;  %v1255_v62 = vpack.c.bf16 %v1248_v50, %v858_v49  ;;  %v2694_v3 = vld [vmem:[%s3431_s3 + $0x1b0] sm:$0xff]  ;;  %v1125_v5 = vpack.c.bf16 %v3046_v54, %v3030_v48 }
  0x30   : > { %1202 = vmatpush.bf16.msrb.mxu0 %v2679_v6  ;;  %v2732_v6 = vunpack.c.h.bf16 %v2994_v26  ;;  %v2693_v26 = vld [vmem:[%s3431_s3 + $0x1a8] sm:$0xff]  ;;  %v1127_v48 = vpack.c.bf16 %v3039_v52, %v3012_v38  ;;  %v2712_v38 = vld [vmem:[%s3306_s22] sm:$0xff] }
  0x31   : > { %943 = vmatpush.bf16.msrb.mxu2 %v2662_v8  ;;  %v2702_v8 = vld [vmem:[%s3431_s3 + $0x1f0] sm:$0xff]  ;;  %v2713_v52 = vld [vmem:[%s3306_s22 + $0x8] sm:$0xff] }
  0x32   : > { %1073 = vmatpush.bf16.msrb.mxu3 %v2670_v9  ;;  %1333 = vmatpush.bf16.msrb.mxu1 %v2686_v10  ;;  %v524_v9 = vmul.f32 %v2964_v7, %v2732_v6  ;;  %v2701_v10 = vld [vmem:[%s3431_s3 + $0x1e8] sm:$0xff]  ;;  %v2710_v7 = vld [vmem:[%s3431_s3 + $0x230] sm:$0xff] }
  0x34   : > { %1203 = vmatpush.bf16.msrb.mxu0 %v2678_v11  ;;  %v536_v54 = vadd.f32 %v2973_v12, %v524_v9  ;;  %v2700_v12 = vld [vmem:[%s3431_s3 + $0x1e0] sm:$0xff] }
  0x35   : > { %944 = vmatpush.bf16.msrb.mxu2 %v2661_v13  ;;  %v2692_v13 = vld [vmem:[%s3431_s3 + $0x1a0] sm:$0xff] }
  0x36   : > { %1074 = vmatpush.bf16.msrb.mxu3 %v2669_v14  ;;  %1334 = vmatpush.bf16.msrb.mxu1 %v2685_v15  ;;  %v552_v11 = vmul.f32 0.2, %v536_v54  ;;  %vm544_vm7 = vcmp.ge.f32.partialorder %v536_v54, 0.0  ;;  %v2709_v15 = vld [vmem:[%s3431_s3 + $0x228] sm:$0xff] }
  0x38   : > { %1204 = vmatpush.bf16.msrb.mxu0 %v2677_v16  ;;  %v3242_v14 = vsel %vm544_vm7, %v536_v54, %v552_v11  ;;  %v860_v16 = vld [vmem:[#allocation2 + $0x32] sm:$0xff] }
  0x39   : > { %945 = vmatpush.bf16.msrb.mxu2 %v2660_v17  ;;  %589 = vst [vmem:[#allocation2 + $0x81] sm:$0xff] %v3242_v14  ;;  %v1250_v17 = vld [vmem:[#allocation2 + $0x42] sm:$0xff] }
  0x3a   : > { %1075 = vmatpush.bf16.msrb.mxu3 %v2668_v18  ;;  %1335 = vmatpush.bf16.msrb.mxu1 %v2684_v19  ;;  %v2691_v18 = vld [vmem:[%s3431_s3 + $0x198] sm:$0xff]  ;;  %v1256_v24 = vpack.c.bf16 %v1250_v17, %v860_v16 }
  0x3b   : > { %v2699_v19 = vld [vmem:[%s3431_s3 + $0x1d8] sm:$0xff] }
  0x3c   : > { %1205 = vmatpush.bf16.msrb.mxu0 %v2676_v22  ;;  %705 = vmatmul.bf16.gmra.mxu2 %v3140_v27  ;;  %v2708_v22 = vld [vmem:[%s3431_s3 + $0x220] sm:$0xff] }
  0x3d   : > { %946 = vmatpush.bf16.msrb.mxu2 %v2659_v23  ;;  %825 = vmatmul.bf16.gmra.mxu1 %v3144_v28  ;;  %v866_v23 = vpack.c.bf16 %v860_v16, %v1248_v50 }
  0x3e   : > { %1336 = vmatpush.bf16.msrb.mxu1 %v2683_v30  ;;  %1076 = vmatpush.bf16.msrb.mxu3 %v2667_v31  ;;  %v996_v30 = vpack.c.bf16 %v3057_v58, %v3136_v25  ;;  %v2690_v31 = vld [vmem:[%s3431_s3 + $0x190] sm:$0xff]  ;;  %v2689_v58 = vld [vmem:[%s3431_s3 + $0x188] sm:$0xff]  ;;  %v2688_v25 = vld [vmem:[%s3431_s3 + $0x180] sm:$0xff] }
  0x3f   : > { %835 = vmatmul.bf16.gmra.mxu3 %v3148_v29  ;;  %695 = vmatmul.bf16.gmra.mxu0 %v3158_v32 }
  0x40   : > { %1206 = vmatpush.bf16.msrb.mxu0 %v2675_v33  ;;  %v1126_v33 = vpack.c.bf16 %v3010_v37, %v3055_v57  ;;  %v2697_v37 = vld [vmem:[%s3431_s3 + $0x1c8] sm:$0xff]  ;;  %v2706_v57 = vld [vmem:[%s3431_s3 + $0x210] sm:$0xff]  ;;  %v994_v49 = vld [vmem:[#allocation2 + $0x80] sm:$0xff] }
  0x41   : > { %947 = vmatpush.bf16.msrb.mxu2 %v2658_v34  ;;  %v2698_v34 = vld [vmem:[%s3431_s3 + $0x1d0] sm:$0xff]  ;;  %v1254_v47 = vld [vmem:[#allocation2 + $0x82] sm:$0xff]  ;;  %v1389_v6 = vpack.c.bf16 0.0, %v994_v49 }
  0x42   : > { %1337 = vmatpush.bf16.msrb.mxu1 %v2682_v35  ;;  %1077 = vmatpush.bf16.msrb.mxu3 %v2666_v36  ;;  %v2707_v35 = vld [vmem:[%s3431_s3 + $0x218] sm:$0xff]  ;;  %v2696_v36 = vld [vmem:[%s3431_s3 + $0x1c0] sm:$0xff] }
  0x44   : > { %1207 = vmatpush.bf16.msrb.mxu0 %v2674_v39  ;;  %v2705_v39 = vld [vmem:[%s3431_s3 + $0x208] sm:$0xff] }
  0x45   : > { %948 = vmatpush.bf16.msrb.mxu2 %v2657_v40  ;;  %v862_v40 = vld [vmem:[#allocation2 + $0x52] sm:$0xff] }
  0x46   : > { %1338 = vmatpush.bf16.msrb.mxu1 %v2681_v41  ;;  %1078 = vmatpush.bf16.msrb.mxu3 %v2665_v42  ;;  %v1252_v41 = vld [vmem:[#allocation2 + $0x62] sm:$0xff] }
  0x47   : > { %v2704_v42 = vld [vmem:[%s3431_s3 + $0x200] sm:$0xff] }
  0x48   : > { %1208 = vmatpush.bf16.msrb.mxu0 %v2673_v43  ;;  %v867_v43 = vpack.c.bf16 %v862_v40, %v1250_v17 }
  0x49   : > { %949 = vmatpush.bf16.msrb.mxu2 %v2656_v44  ;;  %v1257_v44 = vpack.c.bf16 %v1252_v41, %v862_v40 }
  0x4a   : > { %1339 = vmatpush.bf16.msrb.mxu1 %v2680_v45  ;;  %1079 = vmatpush.bf16.msrb.mxu3 %v2664_v51  ;;  %v997_v45 = vpack.c.bf16 %v3124_v20, %v3059_v59 }
  0x4c   : > { %1209 = vmatpush.bf16.msrb.mxu0 %v2672_v56  ;;  %950 = vmatmul.bf16.vlgmr.msrb.gmra.mxu2 %v865_v61  ;;  %v1128_v56 = vpack.c.bf16 %v3242_v14, %v3043_v53  ;;  %v2714_v53 = vld [vmem:[%s3306_s22 + $0x10] sm:$0xff] }
  0x4d   : > { %1463 = vmatpush.bf16.msra.mxu2 %v2695_v46  ;;  %1340 = vmatmul.bf16.vlgmr.msrb.gmra.mxu1 %v1255_v62  ;;  %v864_v46 = vld [vmem:[#allocation2 + $0x72] sm:$0xff] }
  0x4e   : > { %1888 = vmatpush.bf16.msra.mxu1 %v2716_v55  ;;  %1593 = vmatpush.bf16.msra.mxu3 %v2703_v60  ;;  %v868_v50 = vpack.c.bf16 %v864_v46, %v1252_v41  ;;  %v1258_v51 = vpack.c.bf16 %v1254_v47, %v864_v46  ;;  %v998_v55 = vpack.c.bf16 %v994_v49, %v3126_v21  ;;  %v1515_v62 = vld [vmem:[#allocation2 + $0x91] sm:$0xff] }
  0x4f   : > { %1080 = vmatmul.bf16.vlgmr.msrb.gmra.mxu3 %v995_v0  ;;  %1210 = vmatmul.bf16.vlgmr.msrb.gmra.mxu0 %v1125_v5  ;;  %v1519_v9 = vpack.c.bf16 %v1515_v62, %v3242_v14 }
  0x50   : > { %1723 = vmatpush.bf16.msra.mxu0 %v2711_v4 }
  0x51   : > { %1464 = vmatpush.bf16.msra.mxu2 %v2694_v3  ;;  %v1645_v3 = vld [vmem:[#allocation2 + $0x92] sm:$0xff] }
  0x52   : > { %1594 = vmatpush.bf16.msra.mxu3 %v2702_v8  ;;  %v2715_v8 = vld [vmem:[%s3306_s22 + $0x18] sm:$0xff]  ;;  %s3385_s22 = scalar_lea.vmem %s3435_s7, %s2949_s12 }
  0x54   : > { %1724 = vmatpush.bf16.msra.mxu0 %v2710_v7 }
  0x55   : > { %1465 = vmatpush.bf16.msra.mxu2 %v2693_v26 }
  0x56   : > { %1595 = vmatpush.bf16.msra.mxu3 %v2701_v10 }
  0x58   : > { %1725 = vmatpush.bf16.msra.mxu0 %v2709_v15 }
  0x59   : > { %1466 = vmatpush.bf16.msra.mxu2 %v2692_v13 }
  0x5a   : > { %1596 = vmatpush.bf16.msra.mxu3 %v2700_v12 }
  0x5c   : > { %1726 = vmatpush.bf16.msra.mxu0 %v2708_v22  ;;  %955 = vmatmul.bf16.gmra.mxu2 %v866_v23 }
  0x5d   : > { %1467 = vmatpush.bf16.msra.mxu2 %v2691_v18  ;;  %1345 = vmatmul.bf16.gmra.mxu1 %v1256_v24 }
  0x5e   : > { %1597 = vmatpush.bf16.msra.mxu3 %v2699_v19 }
  0x5f   : > { %1085 = vmatmul.bf16.gmra.mxu3 %v996_v30  ;;  %1215 = vmatmul.bf16.gmra.mxu0 %v1126_v33 }
  0x60   : > { %1727 = vmatpush.bf16.msra.mxu0 %v2707_v35 }
  0x61   : > { %1468 = vmatpush.bf16.msra.mxu2 %v2690_v31 }
  0x62   : > { %1598 = vmatpush.bf16.msra.mxu3 %v2698_v34 }
  0x64   : > { %1728 = vmatpush.bf16.msra.mxu0 %v2706_v57 }
  0x65   : > { %1469 = vmatpush.bf16.msra.mxu2 %v2689_v58 }
  0x66   : > { %1599 = vmatpush.bf16.msra.mxu3 %v2697_v37 }
  0x68   : > { %1729 = vmatpush.bf16.msra.mxu0 %v2705_v39 }
  0x69   : > { %1470 = vmatpush.bf16.msra.mxu2 %v2688_v25 }
  0x6a   : > { %1600 = vmatpush.bf16.msra.mxu3 %v2696_v36 }
  0x6c   : > { %1730 = vmatpush.bf16.msra.mxu0 %v2704_v42  ;;  %960 = vmatmul.bf16.gmra.mxu2 %v867_v43 }
  0x6d   : > { %1350 = vmatmul.bf16.gmra.mxu1 %v1257_v44 }
  0x6f   : > { %1090 = vmatmul.bf16.gmra.mxu3 %v997_v45  ;;  %1220 = vmatmul.bf16.gmra.mxu0 %v1127_v48 }
  0x7c   : > { %965 = vmatmul.bf16.gmra.mxu2 %v868_v50 }
  0x7d   : > { %1355 = vmatmul.bf16.gmra.mxu1 %v1258_v51 }
  0x7f   : > { %1095 = vmatmul.bf16.gmra.mxu3 %v998_v55  ;;  %1225 = vmatmul.bf16.gmra.mxu0 %v1128_v56 }
  0x8c   : > { %1471 = vmatmul.bf16.vlgmr.msra.gmra.mxu2 %v3158_v32 }
  0x8d   : > { %2630 = vmatmul.msk.bf16.vlgmr.msra.gmra.mxu1 %vm1868_vm8, %v2712_v38 }
  0x8f   : > { %1601 = vmatmul.bf16.vlgmr.msra.gmra.mxu3 %v3144_v28  ;;  %1731 = vmatmul.bf16.vlgmr.msra.gmra.mxu0 %v866_v23 }
  0x9c   : > { %1476 = vmatmul.bf16.gmra.mxu2 %v3072_v63 }
  0x9d   : > { %2631 = vmatmul.msk.bf16.gmra.mxu1 %vm1868_vm8, %v2713_v52 }
  0x9f   : > { %1606 = vmatmul.bf16.gmra.mxu3 %v3077_v1  ;;  %1736 = vmatmul.bf16.gmra.mxu0 %v867_v43 }
  0xaa   : > { %v821_v59 = vpop.f32.mrf.mxu1 }
  0xac   : > { %v691_v20 = vpop.f32.mrf.mxu0  ;;  %1481 = vmatmul.bf16.gmra.mxu2 %v3140_v27 }
  0xad   : > { %v841_v21 = vadd.f32 %v821_v59, %v691_v20  ;;  %2632 = vmatmul.msk.bf16.gmra.mxu1 %vm1868_vm8, %v2714_v53 }
  0xaf   : > { %1611 = vmatmul.bf16.gmra.mxu3 %v3148_v29  ;;  %1741 = vmatmul.bf16.gmra.mxu0 %v868_v50  ;;  %v701_v28 = vpop.f32.mrf.mxu2  ;;  %v1649_v29 = vpack.c.bf16 %v1645_v3, %v1254_v47 }
  0xb2   : > { %v831_v32 = vpop.f32.mrf.mxu3  ;;  %v823_v60 = vpop.f32.mrf.mxu1 }
  0xb3   : > { %v3320_v63 = vadd.f32 %v831_v32, %v701_v28 }
  0xb4   : > { %v693_v61 = vpop.f32.mrf.mxu0 }
  0xb5   : > { %v842_v1 = vadd.f32 %v823_v60, %v693_v61 }
  0xb7   : > { %v703_v0 = vpop.f32.mrf.mxu2 }
  0xba   : > { %v833_v5 = vpop.f32.mrf.mxu3  ;;  %v826_v27 = vpop.f32.mrf.mxu1 }
  0xbb   : > { %v3323_v4 = vadd.f32 %v833_v5, %v703_v0 }
  0xbc   : > { %v696_v26 = vpop.f32.mrf.mxu0  ;;  %1486 = vmatmul.bf16.gmra.mxu2 %v1389_v6 }
  0xbd   : > { %v843_v48 = vadd.f32 %v826_v27, %v696_v26  ;;  %2633 = vmatmul.msk.bf16.gmra.mxu1 %vm1868_vm8, %v2715_v8 }
  0xbf   : > { %1616 = vmatmul.bf16.gmra.mxu3 %v1519_v9  ;;  %1746 = vmatmul.bf16.gmra.mxu0 %v1649_v29  ;;  %v706_v54 = vpop.f32.mrf.mxu2 }
  0xc2   : > { %v836_v10 = vpop.f32.mrf.mxu3  ;;  %v828_v11 = vpop.f32.mrf.mxu1 }
  0xc3   : > { %v3327_v7 = vadd.f32 %v836_v10, %v706_v54 }
  0xc4   : > { %v698_v13 = vpop.f32.mrf.mxu0 }
  0xc5   : > { %v844_v12 = vadd.f32 %v828_v11, %v698_v13 }
  0xc7   : > { %v708_v15 = vpop.f32.mrf.mxu2 }
  0xca   : > { %v838_v14 = vpop.f32.mrf.mxu3  ;;  %v1341_v17 = vpop.f32.mrf.mxu1 }
  0xcb   : > { %v3341_v16 = vadd.f32 %v838_v14, %v708_v15 }
  0xcc   : > { %v1211_v18 = vpop.f32.mrf.mxu0 }
  0xcf   : > { %v951_v19 = vpop.f32.mrf.mxu2 }
  0xd0   : > { %v971_v22 = vadd.f32 %v951_v19, %v841_v21 }
  0xd2   : > { %v1081_v23 = vpop.f32.mrf.mxu3  ;;  %v1343_v24 = vpop.f32.mrf.mxu1 }
  0xd3   : > { %v1101_v30 = vadd.f32 %v1081_v23, %v971_v22 }
  0xd4   : > { %v1213_v31 = vpop.f32.mrf.mxu0 }
  0xd5   : > { %v1231_v33 = vadd.f32 %v1211_v18, %v1101_v30 }
  0xd7   : > { %v1361_v34 = vadd.f32 %v1341_v17, %v1231_v33  ;;  %v953_v35 = vpop.f32.mrf.mxu2 }
  0xd8   : > { %v972_v58 = vadd.f32 %v953_v35, %v842_v1 }
  0xda   : > { %v1083_v37 = vpop.f32.mrf.mxu3  ;;  %v1346_v57 = vpop.f32.mrf.mxu1 }
  0xdb   : > { %v1102_v25 = vadd.f32 %v1083_v37, %v972_v58 }
  0xdc   : > { %v1216_v36 = vpop.f32.mrf.mxu0 }
  0xdd   : > { %v1232_v39 = vadd.f32 %v1213_v31, %v1102_v25 }
  0xdf   : > { %v1362_v40 = vadd.f32 %v1343_v24, %v1232_v39  ;;  %v956_v41 = vpop.f32.mrf.mxu2 }
  0xe0   : > { %v973_v42 = vadd.f32 %v956_v41, %v843_v48 }
  0xe2   : > { %v1086_v43 = vpop.f32.mrf.mxu3  ;;  %v1348_v44 = vpop.f32.mrf.mxu1 }
  0xe3   : > { %v1103_v45 = vadd.f32 %v1086_v43, %v973_v42 }
  0xe4   : > { %v1218_v46 = vpop.f32.mrf.mxu0 }
  0xe5   : > { %v1233_v47 = vadd.f32 %v1216_v36, %v1103_v45 }
  0xe7   : > { %v3363_v49 = vadd.f32 %v1346_v57, %v1233_v47  ;;  %v958_v50 = vpop.f32.mrf.mxu2 }
  0xe8   : > { %v974_v51 = vadd.f32 %v958_v50, %v844_v12 }
  0xea   : > { %v1088_v2 = vpop.f32.mrf.mxu3  ;;  %v1351_v55 = vpop.f32.mrf.mxu1 }
  0xeb   : > { %v1104_v56 = vadd.f32 %v1088_v2, %v974_v51 }
  0xec   : > { %v1221_v38 = vpop.f32.mrf.mxu0 }
  0xed   : > { %v1234_v52 = vadd.f32 %v1218_v46, %v1104_v56 }
  0xef   : > { %v3365_v53 = vadd.f32 %v1348_v44, %v1234_v52  ;;  %v961_v59 = vpop.f32.mrf.mxu2 }
  0xf0   : > { %v975_v20 = vadd.f32 %v961_v59, %v3320_v63 }
  0xf2   : > { %v1091_v21 = vpop.f32.mrf.mxu3  ;;  %v1353_v28 = vpop.f32.mrf.mxu1 }
  0xf3   : > { %v1105_v32 = vadd.f32 %v1091_v21, %v975_v20 }
  0xf4   : > { %v1223_v60 = vpop.f32.mrf.mxu0 }
  0xf5   : > { %v1235_v61 = vadd.f32 %v1221_v38, %v1105_v32 }
  0xf7   : > { %v3368_v1 = vadd.f32 %v1351_v55, %v1235_v61  ;;  %v963_v62 = vpop.f32.mrf.mxu2 }
  0xf8   : > { %v976_v0 = vadd.f32 %v963_v62, %v3323_v4 }
  0xfa   : > { %v1093_v3 = vpop.f32.mrf.mxu3  ;;  %v1356_v5 = vpop.f32.mrf.mxu1 }
  0xfb   : > { %v1106_v6 = vadd.f32 %v1093_v3, %v976_v0 }
  0xfc   : > { %v1226_v8 = vpop.f32.mrf.mxu0 }
  0xfd   : > { %v1236_v27 = vadd.f32 %v1223_v60, %v1106_v6 }
  0xff   : > { %v3371_v9 = vadd.f32 %v1353_v28, %v1236_v27  ;;  %v966_v29 = vpop.f32.mrf.mxu2 }
 0x100   : > { %v977_v63 = vadd.f32 %v966_v29, %v3327_v7 }
 0x102   : > { %v1096_v26 = vpop.f32.mrf.mxu3  ;;  %v1358_v48 = vpop.f32.mrf.mxu1 }
 0x103   : > { %v1107_v54 = vadd.f32 %v1096_v26, %v977_v63 }
 0x104   : > { %v1228_v10 = vpop.f32.mrf.mxu0 }
 0x105   : > { %v1237_v11 = vadd.f32 %v1226_v8, %v1107_v54 }
 0x107   : > { %v3374_v13 = vadd.f32 %v1356_v5, %v1237_v11  ;;  %v968_v12 = vpop.f32.mrf.mxu2 }
 0x108   : > { %v978_v4 = vadd.f32 %v968_v12, %v3341_v16 }
 0x10a   : > { %v1098_v15 = vpop.f32.mrf.mxu3  ;;  %v3377_v14 = vpop.f32.mrf.mxu1 }
 0x10b   : > { %v1108_v17 = vadd.f32 %v1098_v15, %v978_v4 }
 0x10c   : > { %v1732_v18 = vpop.f32.mrf.mxu0 }
 0x10d   : > { %v1238_v19 = vadd.f32 %v1228_v10, %v1108_v17 }
 0x10f   : > { %v3379_v22 = vadd.f32 %v1358_v48, %v1238_v19  ;;  %v1472_v7 = vpop.f32.mrf.mxu2 }
 0x110   : > { %v1492_v30 = vadd.f32 %v1472_v7, %v1361_v34 }
 0x112   : > { %v1602_v23 = vpop.f32.mrf.mxu3  ;;  %v1892_v24 = vpop.f32.mrf.mxu1 }
 0x113   : > { %v2756_v16 = vpack.c.bf16 %v1892_v24, %v3377_v14  ;;  %v1622_v33 = vadd.f32 %v1602_v23, %v1492_v30  ;;  %v1944_v48 = vmul.f32 %v1892_v24, %v1892_v24  ;;  %v1927_v11 = vadd.f32 %v1892_v24, %v3377_v14 }
 0x114   : > { %v1734_v31 = vpop.f32.mrf.mxu0 }
 0x115   : > { %2757 = vst [vmem:[%s3385_s22] sm:$0xff] %v2756_v16   ;;  %v1752_v25 = vadd.f32 %v1732_v18, %v1622_v33 }
 0x117   : > { %v1474_v35 = vpop.f32.mrf.mxu2  ;;  %v1809_v34 = vmul.f32 %v1752_v25, %v1752_v25 }
 0x118   : > { %v1493_v58 = vadd.f32 %v1474_v35, %v1362_v40 }
 0x11a   : > { %v1604_v37 = vpop.f32.mrf.mxu3  ;;  %v1895_v57 = vpop.f32.mrf.mxu1 }
 0x11b   : > { %v1623_v36 = vadd.f32 %v1604_v37, %v1493_v58  ;;  %v1945_v10 = vmul.f32 %v1895_v57, %v1895_v57 }
 0x11c   : > { %v1737_v39 = vpop.f32.mrf.mxu0 }
 0x11d   : > { %v1753_v41 = vadd.f32 %v1734_v31, %v1623_v36 }
 0x11f   : > { %v2736_v42 = vpack.c.bf16 %v1753_v41, %v1752_v25  ;;  %v1793_v43 = vadd.f32 %v1753_v41, %v1752_v25  ;;  %v1810_v44 = vmul.f32 %v1753_v41, %v1753_v41  ;;  %v1477_v45 = vpop.f32.mrf.mxu2 }
 0x120   : > { %v1494_v46 = vadd.f32 %v1477_v45, %v3363_v49 }
 0x121   : > { %2737 = vst [vmem:[%s3393_s26] sm:$0xff] %v2736_v42   ;;  %v1817_v40 = vadd.f32 %v1810_v44, %v1809_v34 }
 0x122   : > { %v1607_v47 = vpop.f32.mrf.mxu3  ;;  %v1897_v50 = vpop.f32.mrf.mxu1 }
 0x123   : > { %v1624_v51 = vadd.f32 %v1607_v47, %v1494_v46  ;;  %v2761_v2 = vpack.c.bf16 %v1897_v50, %v1895_v57  ;;  %v1946_v17 = vmul.f32 %v1897_v50, %v1897_v50 }
 0x124   : > { %v1739_v55 = vpop.f32.mrf.mxu0 }
 0x125   : > { %v1754_v56 = vadd.f32 %v1737_v39, %v1624_v51  ;;  %2779 = vst [vmem:[%s3385_s22 + $0x8] sm:$0xff] %v2761_v2  }
 0x127   : > { %v1794_v38 = vadd.f32 %v1793_v43, %v1754_v56  ;;  %v1811_v52 = vmul.f32 %v1754_v56, %v1754_v56  ;;  %v1479_v59 = vpop.f32.mrf.mxu2 }
 0x128   : > { %v1495_v21 = vadd.f32 %v1479_v59, %v3365_v53  ;;  %v1943_v53 = vmul.f32 %v3377_v14, %v3377_v14 }
 0x129   : > { %v1818_v20 = vadd.f32 %v1817_v40, %v1811_v52 }
 0x12a   : > { %v1609_v28 = vpop.f32.mrf.mxu3  ;;  %v1900_v32 = vpop.f32.mrf.mxu1  ;;  %v1951_v15 = vadd.f32 %v1944_v48, %v1943_v53  ;;  %v1926_v53 = vld [vmem:[%s3333_s25] sm:$0x1] }
 0x12b   : > { %v1625_v60 = vadd.f32 %v1609_v28, %v1495_v21  ;;  %v1947_v31 = vmul.f32 %v1900_v32, %v1900_v32 }
 0x12c   : > { %v1742_v49 = vpop.f32.mrf.mxu0  ;;  %v1952_v16 = vadd.f32 %v1951_v15, %v1945_v10 }
 0x12d   : > { %v1755_v61 = vadd.f32 %v1739_v55, %v1625_v60 }
 0x12e   : > { %v1953_v37 = vadd.f32 %v1952_v16, %v1946_v17 }
 0x12f   : > { %v2741_v62 = vpack.c.bf16 %v1755_v61, %v1754_v56  ;;  %v1795_v0 = vadd.f32 %v1794_v38, %v1755_v61  ;;  %v1812_v3 = vmul.f32 %v1755_v61, %v1755_v61  ;;  %v1482_v5 = vpop.f32.mrf.mxu2 }
 0x130   : > { %v1496_v8 = vadd.f32 %v1482_v5, %v3368_v1  ;;  %v1928_v1 = vadd.f32 %v1927_v11, %v1895_v57  ;;  %v1954_v36 = vadd.f32 %v1953_v37, %v1947_v31 }
 0x131   : > { %2776 = vst [vmem:[%s3393_s26 + $0x8] sm:$0xff] %v2741_v62   ;;  %v1819_v6 = vadd.f32 %v1818_v20, %v1812_v3 }
 0x132   : > { %v1612_v27 = vpop.f32.mrf.mxu3  ;;  %v1902_v29 = vpop.f32.mrf.mxu1  ;;  %v1929_v35 = vadd.f32 %v1928_v1, %v1897_v50 }
 0x133   : > { %v1626_v63 = vadd.f32 %v1612_v27, %v1496_v8  ;;  %v2766_v26 = vpack.c.bf16 %v1902_v29, %v1900_v32  ;;  %v1948_v25 = vmul.f32 %v1902_v29, %v1902_v29 }
 0x134   : > { %v1744_v18 = vpop.f32.mrf.mxu0  ;;  %v1930_v14 = vadd.f32 %v1929_v35, %v1900_v32  ;;  %v1792_v35 = vld [vmem:[%s3351_s13] sm:$0x1] }
 0x135   : > { %v1756_v54 = vadd.f32 %v1742_v49, %v1626_v63  ;;  %2780 = vst [vmem:[%s3385_s22 + $0x10] sm:$0xff] %v2766_v26   ;;  %v1955_v43 = vadd.f32 %v1954_v36, %v1948_v25 }
 0x136   : > { %v1931_v41 = vadd.f32 %v1930_v14, %v1902_v29 }
 0x137   : > { %v1796_v12 = vadd.f32 %v1795_v0, %v1756_v54  ;;  %v1813_v4 = vmul.f32 %v1756_v54, %v1756_v54  ;;  %v1484_v19 = vpop.f32.mrf.mxu2 }
 0x138   : > { %v1497_v23 = vadd.f32 %v1484_v19, %v3371_v9 }
 0x139   : > { %v1820_v7 = vadd.f32 %v1819_v6, %v1813_v4 }
 0x13a   : > { %v1614_v30 = vpop.f32.mrf.mxu3  ;;  %v1905_v33 = vpop.f32.mrf.mxu1 }
 0x13b   : > { %v1627_v58 = vadd.f32 %v1614_v30, %v1497_v23  ;;  %v1949_v39 = vmul.f32 %v1905_v33, %v1905_v33  ;;  %v1932_v45 = vadd.f32 %v1931_v41, %v1905_v33 }
 0x13c   : > { %v1747_v50 = vpop.f32.mrf.mxu0 }
 0x13d   : > { %v1757_v24 = vadd.f32 %v1744_v18, %v1627_v58  ;;  %v1956_v47 = vadd.f32 %v1955_v43, %v1949_v39 }
 0x13f   : > { %v2746_v34 = vpack.c.bf16 %v1757_v24, %v1756_v54  ;;  %v1797_v42 = vadd.f32 %v1796_v12, %v1757_v24  ;;  %v1814_v57 = vmul.f32 %v1757_v24, %v1757_v24  ;;  %v1487_v9 = vpop.f32.mrf.mxu2  ;;  %v1942_v12 = vld [vmem:[%s3339_s28] sm:$0x1] }
 0x140   : > { %v1498_v40 = vadd.f32 %v1487_v9, %v3374_v13  ;;  %v1808_v24 = vld [vmem:[%s3357_s16] sm:$0x1] }
 0x141   : > { %2777 = vst [vmem:[%s3393_s26 + $0x10] sm:$0xff] %v2746_v34   ;;  %v1821_v44 = vadd.f32 %v1820_v7, %v1814_v57 }
 0x142   : > { %v1617_v46 = vpop.f32.mrf.mxu3  ;;  %v1907_v51 = vpop.f32.mrf.mxu1 }
 0x143   : > { %v1628_v2 = vadd.f32 %v1617_v46, %v1498_v40  ;;  %v2771_v55 = vpack.c.bf16 %v1907_v51, %v1905_v33  ;;  %v1933_v56 = vadd.f32 %v1932_v45, %v1907_v51  ;;  %v1950_v38 = vmul.f32 %v1907_v51, %v1907_v51 }
 0x144   : > { %v1749_v27 = vpop.f32.mrf.mxu0 }
 0x145   : > { %v1758_v52 = vadd.f32 %v1747_v50, %v1628_v2  ;;  %2781 = vst [vmem:[%s3385_s22 + $0x18] sm:$0xff] %v2771_v55   ;;  %v1934_v59 = vrot.slane %v1933_v56, 4  ;;  %v1957_v20 = vadd.f32 %v1956_v47, %v1950_v38 }
 0x147   : > { %v1798_v21 = vadd.f32 %v1797_v42, %v1758_v52  ;;  %v1815_v28 = vmul.f32 %v1758_v52, %v1758_v52  ;;  %v1935_v32 = vadd.f32 %v1934_v59, %v1933_v56  ;;  %v1958_v60 = vrot.slane %v1957_v20, 4  ;;  %v1489_v61 = vpop.f32.mrf.mxu2 }
 0x148   : > { %v1499_v0 = vadd.f32 %v1489_v61, %v3379_v22 }
 0x149   : > { %v1822_v49 = vadd.f32 %v1821_v44, %v1815_v28  ;;  %v1936_v13 = vrot.slane %v1935_v32, 2  ;;  %v1959_v62 = vadd.f32 %v1958_v60, %v1957_v20 }
 0x14a   : > { %v1619_v3 = vpop.f32.mrf.mxu3 }
 0x14b   : > { %v1937_v5 = vadd.f32 %v1936_v13, %v1935_v32  ;;  %v1960_v6 = vrot.slane %v1959_v62, 2  ;;  %v1629_v8 = vadd.f32 %v1619_v3, %v1499_v0 }
 0x14d   : > { %v1938_v29 = vrot.slane %v1937_v5, 1  ;;  %v1961_v63 = vadd.f32 %v1960_v6, %v1959_v62  ;;  %v1759_v26 = vadd.f32 %v1749_v27, %v1629_v8 }
 0x14f   : > { %v1939_v48 = vadd.f32 %v1938_v29, %v1937_v5  ;;  %v1962_v54 = vrot.slane %v1961_v63, 1  ;;  %v2751_v10 = vpack.c.bf16 %v1759_v26, %v1758_v52  ;;  %v1799_v11 = vadd.f32 %v1798_v21, %v1759_v26 }
 0x150   : > { %v1816_v4 = vmul.f32 %v1759_v26, %v1759_v26 }
 0x151   : > { %v1940_v22 = vadd.f32 %v1939_v48, %v1926_v53  ;;  %v1963_v15 = vadd.f32 %v1962_v54, %v1961_v63  ;;  %2778 = vst [vmem:[%s3393_s26 + $0x18] sm:$0xff] %v2751_v10   ;;  %v1800_v17 = vrot.slane %v1799_v11, 4 }
 0x152   : > { %v1823_v18 = vadd.f32 %v1822_v49, %v1816_v4 }
 0x153   : > { %1941 = vst [vmem:[%s3333_s25] sm:$0x1] %v1940_v22  ;;  %v1964_v19 = vadd.f32 %v1963_v15, %v1942_v12  ;;  %v1801_v1 = vadd.f32 %v1800_v17, %v1799_v11 }
 0x154   : > { %v1824_v7 = vrot.slane %v1823_v18, 4 }
 0x155   : > { %1965 = vst [vmem:[%s3339_s28] sm:$0x1] %v1964_v19  ;;  %v1802_v23 = vrot.slane %v1801_v1, 2 }
 0x156   : > { %v1825_v30 = vadd.f32 %v1824_v7, %v1823_v18 }
 0x157   : > { %v1803_v16 = vadd.f32 %v1802_v23, %v1801_v1 }
 0x158   : > { %v1826_v31 = vrot.slane %v1825_v30, 2 }
 0x159   : > { %v1804_v33 = vrot.slane %v1803_v16, 1 }
 0x15a   : > { %v1827_v58 = vadd.f32 %v1826_v31, %v1825_v30 }
 0x15b   : > { %v1805_v37 = vadd.f32 %v1804_v33, %v1803_v16 }
 0x15c   : > { %v1828_v25 = vrot.slane %v1827_v58, 1 }
 0x15d   : > { %v1806_v14 = vadd.f32 %v1805_v37, %v1792_v35 }
 0x15e   : > { %v1829_v36 = vadd.f32 %v1828_v25, %v1827_v58 }
 0x15f   : > { %1807 = vst [vmem:[%s3351_s13] sm:$0x1] %v1806_v14 }
 0x160   : > { %v1830_v39 = vadd.f32 %v1829_v36, %v1808_v24 }
 0x162   : > { %1831 = vst [vmem:[%s3357_s16] sm:$0x1] %v1830_v39 }
 0x163 PF: > { %s22_s19 = sadd.s32 1, %s2847_s19   ;;  %s3440_s17 = smov %s2843_s18 }
 0x164   : > { %p19_p5 = scmp.ge.s32.totalorder %s22_s19, 4   ;;  %s3441_s18 = smov %s3443_s20 }
 0x166   :  { %21 = sbr.rel (!%p19_p5) target bundleno = 2 (0x2), region = 151 }

</bundles_post_ra>
